<compile_context>
chip_gen: v5e
topology: v5e:2x2
jax: 0.10.0
libtpu: 0.0.40
codegen_flags: <defaults>
</compile_context>

<pallas_src>
from functools import partial

import numpy as np
import jax
import jax.numpy as jnp
from jax.experimental import pallas as pl
from jax.experimental.pallas import tpu as pltpu


# ----------------------------------------------------------------------------
# Fused kernel: conv3x3 + BN + ReLU -> 1x1 conv (channels) -> bilinear resize
# ----------------------------------------------------------------------------
def _out_block_kernel(w, x_ref, w1t_ref, shift_ref, w2_ref, mask_ref, r2_ref,
                      b2_ref, o_ref, patch_ref):
    # w        : Python int, input image width (static, bound via partial)
    # x_ref    : (1, Cin, h*w)   input, spatially flattened (lane-dense)
    # w1t_ref  : (64, 9*Cin)     conv1 weights (BN scale folded), transposed
    # shift_ref: (64, 1)         folded BN shift (per-channel column)
    # w2_ref   : (1, 64)         conv2 (1x1) weights as a row vector
    # mask_ref : (9, h*w)        per-tap zero-padding border masks (1.0 / 0.0)
    # r2_ref   : (h*w, H*W)      full bilinear interp matrix (align_corners)
    # b2_ref   : (1,)  SMEM      conv2 bias scalar
    # o_ref    : (1, 1, H*W)     output block (lane-dense store)
    # patch_ref: (9*Cin, h*w)    VMEM im2col scratch, transposed layout
    cin = x_ref.shape[1]
    n = x_ref.shape[2]                                  # h*w
    xflat = x_ref[0]                                    # (Cin, h*w)

    # --- im2col (transposed): 9 lane rolls + border masks, 256-lane stores --
    for dh in range(3):
        for dw in range(3):
            tap = dh * 3 + dw
            off = (dh - 1) * w + (dw - 1)               # flat spatial offset
            if off:
                shifted = pltpu.roll(xflat, shift=(-off) % n, axis=1)
            else:
                shifted = xflat
            patch_ref[tap * cin:(tap + 1) * cin, :] = (
                shifted * mask_ref[tap:tap + 1, :])

    # --- conv3x3 (BN scale pre-folded) as ONE MXU matmul ---------------------
    # channels on sublanes, spatial (h*w) stays on the lane axis
    feat = jnp.dot(w1t_ref[...], patch_ref[...],
                   preferred_element_type=jnp.float32)          # (64, h*w)
    feat = jnp.maximum(feat + shift_ref[...], 0.0)              # BN shift+ReLU

    # --- 1x1 conv channel contraction on the MXU -----------------------------
    s = jnp.dot(w2_ref[...], feat, preferred_element_type=jnp.float32)  # (1, h*w)

    # --- bilinear resize (align_corners=True) as one matmul ------------------
    # result is already flat (1, H*W): unmasked full-lane stores
    out = jnp.dot(s, r2_ref[...], preferred_element_type=jnp.float32)   # (1, H*W)
    o_ref[0] = (out + b2_ref[0]).astype(o_ref.dtype)


# ----------------------------------------------------------------------------
# Host-side helpers
# ----------------------------------------------------------------------------
def _interp_matrix_np(out_size, in_size):
    """Row-stochastic bilinear interp matrix, align_corners=True semantics."""
    if out_size == 1:
        src = np.zeros((1,), np.float64)
    else:
        src = np.arange(out_size, dtype=np.float64) * (in_size - 1) / (out_size - 1)
    p0 = np.clip(np.floor(src).astype(np.int64), 0, in_size - 1)
    p1 = np.minimum(p0 + 1, in_size - 1)
    frac = (src - p0).astype(np.float32)
    R = np.zeros((out_size, in_size), np.float32)
    R[np.arange(out_size), p0] += 1.0 - frac
    R[np.arange(out_size), p1] += frac
    return R


def interp_matrix(out_size, in_size):
    return jnp.asarray(_interp_matrix_np(out_size, in_size))


def full_interp_matrix(H, W, h, w):
    """(h*w, H*W) matrix so that  out_flat = s_flat @ R2  is the 2-D resize."""
    Rh = _interp_matrix_np(H, h)                        # (H, h)
    Rw = _interp_matrix_np(W, w)                        # (W, w)
    return jnp.asarray(np.kron(Rh, Rw).T)               # (h*w, H*W)


def im2col_masks(h, w):
    """(9, h*w) 1/0 masks implementing the conv's zero padding per 3x3 tap."""
    m = np.zeros((9, h, w), np.float32)
    for dh in range(3):
        for dw in range(3):
            di, dj = dh - 1, dw - 1
            i0, i1 = max(0, -di), min(h, h - di)
            j0, j1 = max(0, -dj), min(w, w - dj)
            m[dh * 3 + dw, i0:i1, j0:j1] = 1.0
    return jnp.asarray(m.reshape(9, h * w))


def out_block_forward(x_nchw, params, H, W):
    """x_nchw: (N, Cin, h, w) float32 -> (N, 1, H, W) float32."""
    N, Cin, h, w = x_nchw.shape
    Cout = 64
    n = h * w

    # layout glue is free: keep NCHW, just flatten the spatial dims
    # (contiguous reshape) -- no host-side pad / transpose relayouts.
    x_flat = x_nchw.reshape(N, Cin, n)

    masks = im2col_masks(h, w)                 # (9, h*w)   grid-invariant
    R2 = full_interp_matrix(H, W, h, w)        # (h*w, H*W) grid-invariant

    kernel = partial(_out_block_kernel, w)

    out_flat = pl.pallas_call(
        kernel,
        out_shape=jax.ShapeDtypeStruct((N, 1, H * W), jnp.float32),
        grid=(N,),
        in_specs=[
            pl.BlockSpec((1, Cin, n), lambda b: (b, 0, 0)),
            pl.BlockSpec((Cout, 9 * Cin), lambda b: (0, 0)),
            pl.BlockSpec((Cout, 1), lambda b: (0, 0)),
            pl.BlockSpec((1, Cout), lambda b: (0, 0)),
            pl.BlockSpec((9, n), lambda b: (0, 0)),
            pl.BlockSpec((n, H * W), lambda b: (0, 0)),
            pl.BlockSpec(memory_space=pltpu.MemorySpace.SMEM),   # b2 scalar
        ],
        out_specs=pl.BlockSpec((1, 1, H * W), lambda b: (b, 0, 0)),
        scratch_shapes=[pltpu.VMEM((9 * Cin, n), jnp.float32)],
        compiler_params=pltpu.CompilerParams(
            dimension_semantics=("parallel",),
            vmem_limit_bytes=32 * 1024 * 1024),
    )(x_flat, params["w1t_folded"], params["bn_shift_col"], params["w2_row"],
      masks, R2, params["b2_scalar"])

    return out_flat.reshape(N, 1, H, W)        # free reshape to NCHW


def make_params(key, infilter):
    Cout = 64
    k1, k2, k3, k4, k5, k6, k7 = jax.random.split(key, 7)
    # conv1 weight: PyTorch layout (64, Cin, 3, 3)
    w1_oihw = jax.random.normal(k1, (Cout, infilter, 3, 3), jnp.float32) * 0.1
    # BatchNorm2d(64) params / running stats (inference-mode folding)
    gamma = 1.0 + 0.1 * jax.random.normal(k2, (Cout,), jnp.float32)
    beta = 0.1 * jax.random.normal(k3, (Cout,), jnp.float32)
    rmean = 0.1 * jax.random.normal(k4, (Cout,), jnp.float32)
    rvar = jnp.abs(jax.random.normal(k5, (Cout,), jnp.float32)) + 0.5
    eps = 1e-5
    scale = gamma / jnp.sqrt(rvar + eps)
    shift = beta - rmean * scale
    # conv2: (1, 64, 1, 1) weight + (1,) bias
    w2_full = jax.random.normal(k6, (1, Cout, 1, 1), jnp.float32) * 0.1
    b2 = jax.random.normal(k7, (1,), jnp.float32) * 0.1

    # kernel-side derived params: columns ordered (dh, dw, c) to match the
    # im2col row order tap*Cin + c; BN scale folded into the weights.
    w1t = jnp.transpose(w1_oihw, (0, 2, 3, 1)).reshape(Cout, 9 * infilter)
    return {
        "w1_oihw": w1_oihw,
        "bn_scale": scale,
        "bn_shift": shift,
        "w2_full": w2_full,
        "b2": b2,
        "w1t_folded": w1t * scale[:, None],          # (64, 9*Cin)
        "bn_shift_col": shift.reshape(Cout, 1),      # (64, 1)
        "w2_row": w2_full.reshape(1, Cout),          # (1, 64)
        "b2_scalar": b2.reshape(1),                  # (1,)  SMEM
    }


def reference_forward(x_nchw, params, H, W):
    """Pure-JAX reference mirroring the PyTorch forward (inference-mode BN)."""
    y = jax.lax.conv_general_dilated(
        x_nchw, params["w1_oihw"], (1, 1), ((1, 1), (1, 1)),
        dimension_numbers=("NCHW", "OIHW", "NCHW"))
    scale = params["bn_scale"].reshape(1, -1, 1, 1)
    shift = params["bn_shift"].reshape(1, -1, 1, 1)
    y = jnp.maximum(y * scale + shift, 0.0)
    h, w = y.shape[2], y.shape[3]
    Rh = interp_matrix(H, h)
    Rw = interp_matrix(W, w)
    yi = jnp.einsum("ip,jq,ncpq->ncij", Rh, Rw, y)
    w2 = params["w2_full"].reshape(-1)
    out = jnp.einsum("ncij,c->nij", yi, w2) + params["b2"][0]
    return out[:, None, :, :]


if __name__ == "__main__":
    # small shapes: batch=2, infilter=4, input spatial 16x16, resize to 32x32
    N, Cin, h, w = 2, 4, 16, 16
    H, W = 32, 32

    key = jax.random.PRNGKey(0)
    kx, kp = jax.random.split(key)
    x = jax.random.normal(kx, (N, Cin, h, w), jnp.float32)
    params = make_params(kp, Cin)

    out = out_block_forward(x, params, H, W)
    out = jax.block_until_ready(out)

    ref = jax.block_until_ready(reference_forward(x, params, H, W))
    assert out.shape == (N, 1, H, W), out.shape
    assert jnp.allclose(out, ref, rtol=1e-4, atol=1e-4), (
        float(jnp.max(jnp.abs(out - ref))))

    print("KERNEL_OK")
</pallas_src>

<mosaic_0001>
module attributes {stable_mosaic.version = 11 : i64} {
  func.func @_out_block_kernel(%arg0: i32, %arg1: memref<1x4x256xf32, #tpu.memory_space<vmem>>, %arg2: memref<64x36xf32, #tpu.memory_space<vmem>>, %arg3: memref<64x1xf32, #tpu.memory_space<vmem>>, %arg4: memref<1x64xf32, #tpu.memory_space<vmem>>, %arg5: memref<9x256xf32, #tpu.memory_space<vmem>>, %arg6: memref<256x1024xf32, #tpu.memory_space<vmem>>, %arg7: memref<1xf32, #tpu.memory_space<smem>>, %arg8: memref<1x1x1024xf32, #tpu.memory_space<vmem>>, %arg9: memref<36x256xf32, #tpu.memory_space<vmem>>) attributes {dimension_semantics = [#tpu.dimension_semantics<parallel>], iteration_bounds = array<i64: 2>, scalar_prefetch = 0 : i64, scratch_operands = 1 : i64, tpu.core_type = #tpu.core_type<tc>, window_params = [{transform_indices = @transform_0, window_bounds = array<i64: 1, 4, 256>}, {pipeline_mode = #tpu.pipeline_mode<synchronous>, transform_indices = @transform_1, window_bounds = array<i64: 64, 36>}, {pipeline_mode = #tpu.pipeline_mode<synchronous>, transform_indices = @transform_2, window_bounds = array<i64: 64, 1>}, {pipeline_mode = #tpu.pipeline_mode<synchronous>, transform_indices = @transform_3, window_bounds = array<i64: 1, 64>}, {pipeline_mode = #tpu.pipeline_mode<synchronous>, transform_indices = @transform_4, window_bounds = array<i64: 9, 256>}, {pipeline_mode = #tpu.pipeline_mode<synchronous>, transform_indices = @transform_5, window_bounds = array<i64: 256, 1024>}, {transform_indices = @transform_6, window_bounds = array<i64: 1>}, {transform_indices = @transform_7, window_bounds = array<i64: 1, 1, 1024>}]} {
    %c0 = arith.constant 0 : index
    %c0_0 = arith.constant 0 : index
    %c0_1 = arith.constant 0 : index
    %0 = vector.load %arg1[%c0, %c0_0, %c0_1] : memref<1x4x256xf32, #tpu.memory_space<vmem>>, vector<1x4x256xf32>
    %1 = vector.shape_cast %0 : vector<1x4x256xf32> to vector<4x256xf32>
    %c17_i32 = arith.constant 17 : i32
    %2 = tpu.dynamic_rotate %1 by %c17_i32 dim 1 : vector<4x256xf32>, i32 -> vector<4x256xf32>
    %c0_2 = arith.constant 0 : index
    %c0_3 = arith.constant 0 : index
    %3 = vector.load %arg5[%c0_2, %c0_3] : memref<9x256xf32, #tpu.memory_space<vmem>>, vector<1x256xf32>
    %4 = vector.broadcast %3 : vector<1x256xf32> to vector<4x256xf32>
    %5 = arith.mulf %2, %4 : vector<4x256xf32>
    %c0_4 = arith.constant 0 : index
    %c0_5 = arith.constant 0 : index
    %6 = vector.load %arg9[%c0_4, %c0_5] : memref<36x256xf32, #tpu.memory_space<vmem>>, vector<4x256xf32>
    tpu.vector_store %arg9[%c0_4, %c0_5], %5 {strides = array<i32>} : memref<36x256xf32, #tpu.memory_space<vmem>>, vector<4x256xf32>,
    %c16_i32 = arith.constant 16 : i32
    %7 = tpu.dynamic_rotate %1 by %c16_i32 dim 1 : vector<4x256xf32>, i32 -> vector<4x256xf32>
    %c1 = arith.constant 1 : index
    %c0_6 = arith.constant 0 : index
    %8 = vector.load %arg5[%c1, %c0_6] : memref<9x256xf32, #tpu.memory_space<vmem>>, vector<1x256xf32>
    %9 = vector.broadcast %8 : vector<1x256xf32> to vector<4x256xf32>
    %10 = arith.mulf %7, %9 : vector<4x256xf32>
    %c4 = arith.constant 4 : index
    %c0_7 = arith.constant 0 : index
    %11 = vector.load %arg9[%c4, %c0_7] : memref<36x256xf32, #tpu.memory_space<vmem>>, vector<4x256xf32>
    tpu.vector_store %arg9[%c4, %c0_7], %10 {strides = array<i32>} : memref<36x256xf32, #tpu.memory_space<vmem>>, vector<4x256xf32>,
    %c15_i32 = arith.constant 15 : i32
    %12 = tpu.dynamic_rotate %1 by %c15_i32 dim 1 : vector<4x256xf32>, i32 -> vector<4x256xf32>
    %c2 = arith.constant 2 : index
    %c0_8 = arith.constant 0 : index
    %13 = vector.load %arg5[%c2, %c0_8] : memref<9x256xf32, #tpu.memory_space<vmem>>, vector<1x256xf32>
    %14 = vector.broadcast %13 : vector<1x256xf32> to vector<4x256xf32>
    %15 = arith.mulf %12, %14 : vector<4x256xf32>
    %c8 = arith.constant 8 : index
    %c0_9 = arith.constant 0 : index
    %16 = vector.load %arg9[%c8, %c0_9] : memref<36x256xf32, #tpu.memory_space<vmem>>, vector<4x256xf32>
    tpu.vector_store %arg9[%c8, %c0_9], %15 {strides = array<i32>} : memref<36x256xf32, #tpu.memory_space<vmem>>, vector<4x256xf32>,
    %c1_i32 = arith.constant 1 : i32
    %17 = tpu.dynamic_rotate %1 by %c1_i32 dim 1 : vector<4x256xf32>, i32 -> vector<4x256xf32>
    %c3 = arith.constant 3 : index
    %c0_10 = arith.constant 0 : index
    %18 = vector.load %arg5[%c3, %c0_10] : memref<9x256xf32, #tpu.memory_space<vmem>>, vector<1x256xf32>
    %19 = vector.broadcast %18 : vector<1x256xf32> to vector<4x256xf32>
    %20 = arith.mulf %17, %19 : vector<4x256xf32>
    %c12 = arith.constant 12 : index
    %c0_11 = arith.constant 0 : index
    %21 = vector.load %arg9[%c12, %c0_11] : memref<36x256xf32, #tpu.memory_space<vmem>>, vector<4x256xf32>
    tpu.vector_store %arg9[%c12, %c0_11], %20 {strides = array<i32>} : memref<36x256xf32, #tpu.memory_space<vmem>>, vector<4x256xf32>,
    %c4_12 = arith.constant 4 : index
    %c0_13 = arith.constant 0 : index
    %22 = vector.load %arg5[%c4_12, %c0_13] : memref<9x256xf32, #tpu.memory_space<vmem>>, vector<1x256xf32>
    %23 = vector.broadcast %22 : vector<1x256xf32> to vector<4x256xf32>
    %24 = arith.mulf %1, %23 : vector<4x256xf32>
    %c16 = arith.constant 16 : index
    %c0_14 = arith.constant 0 : index
    %25 = vector.load %arg9[%c16, %c0_14] : memref<36x256xf32, #tpu.memory_space<vmem>>, vector<4x256xf32>
    tpu.vector_store %arg9[%c16, %c0_14], %24 {strides = array<i32>} : memref<36x256xf32, #tpu.memory_space<vmem>>, vector<4x256xf32>,
    %c255_i32 = arith.constant 255 : i32
    %26 = tpu.dynamic_rotate %1 by %c255_i32 dim 1 : vector<4x256xf32>, i32 -> vector<4x256xf32>
    %c5 = arith.constant 5 : index
    %c0_15 = arith.constant 0 : index
    %27 = vector.load %arg5[%c5, %c0_15] : memref<9x256xf32, #tpu.memory_space<vmem>>, vector<1x256xf32>
    %28 = vector.broadcast %27 : vector<1x256xf32> to vector<4x256xf32>
    %29 = arith.mulf %26, %28 : vector<4x256xf32>
    %c20 = arith.constant 20 : index
    %c0_16 = arith.constant 0 : index
    %30 = vector.load %arg9[%c20, %c0_16] : memref<36x256xf32, #tpu.memory_space<vmem>>, vector<4x256xf32>
    tpu.vector_store %arg9[%c20, %c0_16], %29 {strides = array<i32>} : memref<36x256xf32, #tpu.memory_space<vmem>>, vector<4x256xf32>,
    %c241_i32 = arith.constant 241 : i32
    %31 = tpu.dynamic_rotate %1 by %c241_i32 dim 1 : vector<4x256xf32>, i32 -> vector<4x256xf32>
    %c6 = arith.constant 6 : index
    %c0_17 = arith.constant 0 : index
    %32 = vector.load %arg5[%c6, %c0_17] : memref<9x256xf32, #tpu.memory_space<vmem>>, vector<1x256xf32>
    %33 = vector.broadcast %32 : vector<1x256xf32> to vector<4x256xf32>
    %34 = arith.mulf %31, %33 : vector<4x256xf32>
    %c24 = arith.constant 24 : index
    %c0_18 = arith.constant 0 : index
    %35 = vector.load %arg9[%c24, %c0_18] : memref<36x256xf32, #tpu.memory_space<vmem>>, vector<4x256xf32>
    tpu.vector_store %arg9[%c24, %c0_18], %34 {strides = array<i32>} : memref<36x256xf32, #tpu.memory_space<vmem>>, vector<4x256xf32>,
    %c240_i32 = arith.constant 240 : i32
    %36 = tpu.dynamic_rotate %1 by %c240_i32 dim 1 : vector<4x256xf32>, i32 -> vector<4x256xf32>
    %c7 = arith.constant 7 : index
    %c0_19 = arith.constant 0 : index
    %37 = vector.load %arg5[%c7, %c0_19] : memref<9x256xf32, #tpu.memory_space<vmem>>, vector<1x256xf32>
    %38 = vector.broadcast %37 : vector<1x256xf32> to vector<4x256xf32>
    %39 = arith.mulf %36, %38 : vector<4x256xf32>
    %c28 = arith.constant 28 : index
    %c0_20 = arith.constant 0 : index
    %40 = vector.load %arg9[%c28, %c0_20] : memref<36x256xf32, #tpu.memory_space<vmem>>, vector<4x256xf32>
    tpu.vector_store %arg9[%c28, %c0_20], %39 {strides = array<i32>} : memref<36x256xf32, #tpu.memory_space<vmem>>, vector<4x256xf32>,
    %c239_i32 = arith.constant 239 : i32
    %41 = tpu.dynamic_rotate %1 by %c239_i32 dim 1 : vector<4x256xf32>, i32 -> vector<4x256xf32>
    %c8_21 = arith.constant 8 : index
    %c0_22 = arith.constant 0 : index
    %42 = vector.load %arg5[%c8_21, %c0_22] : memref<9x256xf32, #tpu.memory_space<vmem>>, vector<1x256xf32>
    %43 = vector.broadcast %42 : vector<1x256xf32> to vector<4x256xf32>
    %44 = arith.mulf %41, %43 : vector<4x256xf32>
    %c32 = arith.constant 32 : index
    %c0_23 = arith.constant 0 : index
    %45 = vector.load %arg9[%c32, %c0_23] : memref<36x256xf32, #tpu.memory_space<vmem>>, vector<4x256xf32>
    tpu.vector_store %arg9[%c32, %c0_23], %44 {strides = array<i32>} : memref<36x256xf32, #tpu.memory_space<vmem>>, vector<4x256xf32>,
    %c0_24 = arith.constant 0 : index
    %c0_25 = arith.constant 0 : index
    %46 = vector.load %arg2[%c0_24, %c0_25] : memref<64x36xf32, #tpu.memory_space<vmem>>, vector<64x36xf32>
    %c0_26 = arith.constant 0 : index
    %c0_27 = arith.constant 0 : index
    %47 = vector.load %arg9[%c0_26, %c0_27] : memref<36x256xf32, #tpu.memory_space<vmem>>, vector<36x256xf32>
    %cst = arith.constant dense<0.000000e+00> : vector<64x256xf32>
    %48 = tpu.matmul %46, %47, %cst {dimension_numbers = #tpu.dot_dimension_numbers<[1], [0], [0], [1], [0, 0, 1, 1], [], []>} : vector<64x36xf32>, vector<36x256xf32>, vector<64x256xf32> -> vector<64x256xf32>
    %c0_28 = arith.constant 0 : index
    %c0_29 = arith.constant 0 : index
    %49 = vector.load %arg3[%c0_28, %c0_29] : memref<64x1xf32, #tpu.memory_space<vmem>>, vector<64x1xf32>
    %50 = vector.broadcast %49 : vector<64x1xf32> to vector<64x256xf32>
    %51 = arith.addf %48, %50 : vector<64x256xf32>
    %cst_30 = arith.constant 0.000000e+00 : f32
    %52 = vector.broadcast %cst_30 : f32 to vector<64x256xf32>
    %53 = arith.maximumf %51, %52 : vector<64x256xf32>
    %c0_31 = arith.constant 0 : index
    %c0_32 = arith.constant 0 : index
    %54 = vector.load %arg4[%c0_31, %c0_32] : memref<1x64xf32, #tpu.memory_space<vmem>>, vector<1x64xf32>
    %cst_33 = arith.constant dense<0.000000e+00> : vector<1x256xf32>
    %55 = tpu.matmul %54, %53, %cst_33 {dimension_numbers = #tpu.dot_dimension_numbers<[1], [0], [0], [1], [0, 0, 1, 1], [], []>} : vector<1x64xf32>, vector<64x256xf32>, vector<1x256xf32> -> vector<1x256xf32>
    %c0_34 = arith.constant 0 : index
    %c0_35 = arith.constant 0 : index
    %56 = vector.load %arg6[%c0_34, %c0_35] : memref<256x1024xf32, #tpu.memory_space<vmem>>, vector<256x1024xf32>
    %cst_36 = arith.constant dense<0.000000e+00> : vector<1x1024xf32>
    %57 = tpu.matmul %55, %56, %cst_36 {dimension_numbers = #tpu.dot_dimension_numbers<[1], [0], [0], [1], [0, 0, 1, 1], [], []>} : vector<1x256xf32>, vector<256x1024xf32>, vector<1x1024xf32> -> vector<1x1024xf32>
    %c0_37 = arith.constant 0 : index
    %58 = memref.load %arg7[%c0_37] : memref<1xf32, #tpu.memory_space<smem>>
    %59 = vector.broadcast %58 : f32 to vector<1x1024xf32>
    %60 = arith.addf %57, %59 : vector<1x1024xf32>
    %c0_38 = arith.constant 0 : index
    %c0_39 = arith.constant 0 : index
    %c0_40 = arith.constant 0 : index
    %61 = vector.load %arg8[%c0_38, %c0_39, %c0_40] : memref<1x1x1024xf32, #tpu.memory_space<vmem>>, vector<1x1x1024xf32>
    %62 = vector.shape_cast %61 : vector<1x1x1024xf32> to vector<1x1024xf32>
    %63 = vector.shape_cast %60 : vector<1x1024xf32> to vector<1x1x1024xf32>
    tpu.vector_store %arg8[%c0_38, %c0_39, %c0_40], %63 {strides = array<i32>} : memref<1x1x1024xf32, #tpu.memory_space<vmem>>, vector<1x1x1024xf32>,
    return
  }
  func.func @transform_0(%arg0: i32) -> (i32, i32, i32) {
    %c0_i32 = arith.constant 0 : i32
    %c0_i32_0 = arith.constant 0 : i32
    %c0_i32_1 = arith.constant 0 : i32
    return %arg0, %c0_i32, %c0_i32_0 : i32, i32, i32
  }
  func.func @transform_1(%arg0: i32) -> (i32, i32) {
    %c0_i32 = arith.constant 0 : i32
    %c0_i32_0 = arith.constant 0 : i32
    %c0_i32_1 = arith.constant 0 : i32
    return %c0_i32, %c0_i32_0 : i32, i32
  }
  func.func @transform_2(%arg0: i32) -> (i32, i32) {
    %c0_i32 = arith.constant 0 : i32
    %c0_i32_0 = arith.constant 0 : i32
    %c0_i32_1 = arith.constant 0 : i32
    return %c0_i32, %c0_i32_0 : i32, i32
  }
  func.func @transform_3(%arg0: i32) -> (i32, i32) {
    %c0_i32 = arith.constant 0 : i32
    %c0_i32_0 = arith.constant 0 : i32
    %c0_i32_1 = arith.constant 0 : i32
    return %c0_i32, %c0_i32_0 : i32, i32
  }
  func.func @transform_4(%arg0: i32) -> (i32, i32) {
    %c0_i32 = arith.constant 0 : i32
    %c0_i32_0 = arith.constant 0 : i32
    %c0_i32_1 = arith.constant 0 : i32
    return %c0_i32, %c0_i32_0 : i32, i32
  }
  func.func @transform_5(%arg0: i32) -> (i32, i32) {
    %c0_i32 = arith.constant 0 : i32
    %c0_i32_0 = arith.constant 0 : i32
    %c0_i32_1 = arith.constant 0 : i32
    return %c0_i32, %c0_i32_0 : i32, i32
  }
  func.func @transform_6(%arg0: i32) -> i32 {
    %c0_i32 = arith.constant 0 : i32
    %c0_i32_0 = arith.constant 0 : i32
    return %c0_i32 : i32
  }
  func.func @transform_7(%arg0: i32) -> (i32, i32, i32) {
    %c0_i32 = arith.constant 0 : i32
    %c0_i32_0 = arith.constant 0 : i32
    %c0_i32_1 = arith.constant 0 : i32
    return %arg0, %c0_i32, %c0_i32_0 : i32, i32, i32
  }
}

</mosaic_0001>

<bundles_post_ra>
// kernel: tpu_custom_call.1
= control target key start
LH: loop header
LB: loop body
LE: loop exit
PB: predicated region body
PF: predicated region fallthrough
CT: control target
= control target key end

     0   :  { %s1980_s0 = inlined_call_operand.vmem [shape: f32[2,4,256], index: 0, kind: input, shape index: {}]   ;;  %s1981_s1 = inlined_call_operand.vmem [shape: f32[64,36], index: 1, kind: input, shape index: {}]   ;;  %s1982_s2 = inlined_call_operand.vmem [shape: f32[64,1], index: 2, kind: input, shape index: {}]   ;;  %s1983_s3 = inlined_call_operand.vmem [shape: f32[1,64], index: 3, kind: input, shape index: {}]   ;;  %s1984_s4 = inlined_call_operand.vmem [shape: f32[9,256], index: 4, kind: input, shape index: {}]   ;;  %s1985_s5 = inlined_call_operand.hbm [shape: f32[256,1024], index: 5, kind: input, shape index: {}]   ;;  %s1986_s6 = inlined_call_operand.<no memory space> [shape: f32[1], index: 6, kind: input, shape index: {}]   ;;  %s1987_s7 = inlined_call_operand.hbm [shape: f32[2,1,1024], index: 7, kind: output, shape index: {}]  }
   0x1   :  { %12 = sst [smem:[#allocation3]] %s1986_s6 }
   0x2   :  { %13 = vsyncpa [#allocation5], 0 }
   0x3   :  { %14 = vsyncpa [#allocation6], 0 }
   0x4   :  { %16 = vsyncpa [#allocation6 + $0x1], 0  ;;  %s1718_s26 = smov 0   ;;  %s1720_s27 = smov 0  }
   0x5   :  { %s1722_s28 = smov 0   ;;  %s1724_s29 = smov 0  }
   0x6 LB: > { %s1739_s6 = sadd.s32 4294967295, %s1661_s29   ;;  %s1459_s30 = sadd.s32 4294967294, %s1661_s29   ;;  %s1661_s29 = sphi %s1724_s29, %s1993_s29   ;;  %s1657_s28 = sphi %s1722_s28, %s1992_s28   ;;  %s1653_s27 = sphi %s1720_s27, %s1991_s27   ;;  %s1649_s26 = sphi %s1718_s26, %s1990_s26  }
   0x7   : > { %s1743_s8 = sadd.s32 1, %s1661_s29   ;;  %s181_s9 = sadd.s32 1, %s1657_s28 }
   0x8   : > { %s178_s10 = ssub.s32 %s1661_s29, %s1743_s8  ;;  %p191_p0 = scmp.ne.s32.totalorder %s1657_s28, %s1653_s27 }
   0x9   : > { %p179_p1 = scmp.eq.s32.totalorder %s178_s10, 0  ;;  %p192_p2 = scmp.eq.s32.totalorder %s1739_s6, 1 }
   0xa   : > { %p197_p3 = scmp.ne.s32.totalorder %s1653_s27, %s1649_s26  ;;  %p198_p4 = scmp.eq.s32.totalorder %s1459_s30, 1 }
   0xb   : > { %s1754_s11 = scalar_select %p179_p1, %s1657_s28, %s181_s9  }
   0xc   : > { %p1756_p5 = por %p192_p2, %p191_p0  ;;  %p1760_p6 = por %p198_p4, %p197_p3 }
   0xd   : > { %p1460_p7 = scmp.ge.s32.totalorder %s1661_s29, 1  ;;  %p205_p8 = scmp.lt.s32.totalorder %s1661_s29, 3 }
   0xe   : > { %p1515_p9 = scmp.eq.s32.totalorder %s1739_s6, 0  ;;  %s228_s16 = sshll.u32 %s1985_s5, 4  ;;  %s229_s16 = int_to_ptr.hbm [resolvable:$true] %s228_s16 }
   0xf   : > { %p206_p10 = pnand %p1460_p7, %p205_p8  ;;  %s1663_s17 = smov [#allocation4]  }
  0x10   : > { %s230_s18 = sshll.u32 %s1663_s17, 4  ;;  %s1664_s19 = smov 1024   ;;  %s231_s18 = int_to_ptr.vmem [resolvable:$true] %s230_s18 }
  0x11   : > { %p1507_p11 = pneg %p206_p10  ;;  %s1665_s20 = smov 64  }
  0x12   : > { %257 = sbr.rel (%p206_p10) target bundleno = 795 (0x31b), region = 48 }
  0x13   : > { %p1508_p12 = pnand %p1515_p9, %p1507_p11 }
  0x15   : > { %1510 = dma.hbm_to_vmem [thread:$0]  (!%p1508_p12), %s229_s16, 32768, %s231_s18, [#allocation5], %s1664_s19, %s1664_s19, %s1665_s20  }
  0x17   : > { %1640 = dma.done.wait (%p1515_p9), [#allocation5], 32768  }
  0x18   : > { %1642 = vsyncadd (%p1515_p9), [#allocation5], 4294934528  ;;  %p290_p13 = scmp.lt.s32.totalorder %s1739_s6, 1  ;;  %v1471_v3 = vld [vmem:[%s1984_s4 + $0x4] ss:$8 sm:$0x3]  ;;  %v306_v26 = vlaneseq }
  0x19   : > { %s1666_s10 = smov 16   ;;  %v406_v6 = vperm.slane %v1471_v3, 1  ;;  %v405_v7 = vperm.slane %v1471_v3, 0  ;;  %vm408_vm0 = vcmask 1043456   ;;  %s1667_s14 = smov 15   ;;  %vm590_vm9 = vcmask 293888  }
  0x1a   : > { %s291_s21 = scalar_select %p290_p13, %s1739_s6, 1  ;;  %v1787_v27 = vand.u32 127, %v306_v26  ;;  %v1468_v28 = vld [vmem:[%s1984_s4 + $0x1] ss:$8 sm:$0x3]  ;;  %vm720_vm10 = vcmask 523264  }
  0x1b   : > { %v407_v8 = vrot.slane %v406_v6, 4  ;;  %s1668_s15 = smov 1   ;;  %s1669_s16 = smov 127   ;;  %v336_v29 = vperm.slane %v1468_v28, 0  ;;  %v337_v30 = vperm.slane %v1468_v28, 1  ;;  %vm1359_vm11 = vcmask 1042434  }
  0x1c   : > { %s1500_s22 = sshll.u32 %s291_s21, 3  ;;  %s1670_s17 = smov 113   ;;  %vm330_vm1 = vcmp.lt.s32.totalorder %v1787_v27, 16  ;;  %v1470_v41 = vld [vmem:[%s1984_s4 + $0x3] ss:$8 sm:$0x3] }
  0x1d   : > { %s294_s25 = scalar_lea.vmem %s1980_s0, %s1500_s22  ;;  %v409_v11 = vsel %vm408_vm0, %v405_v7, %v407_v8  ;;  %s1671_s18 = smov 112   ;;  %vm382_vm2 = vcmp.lt.s32.totalorder %v1787_v27, 1  ;;  %v388_v42 = vperm.slane %v1470_v41, 0  ;;  %v389_v43 = vperm.slane %v1470_v41, 1 }
  0x1e   : > { %v295_v0 = vld [vmem:[%s294_s25] sm:$0xff]  ;;  %s1672_s19 = smov 17   ;;  %s1673_s20 = smov 111   ;;  %vm429_vm3 = vcmp.lt.s32.totalorder %v1787_v27, 127  ;;  %vm458_vm4 = vcmp.lt.s32.totalorder %v1787_v27, 113  ;;  %vm481_vm5 = vcmp.lt.s32.totalorder %v1787_v27, 112 }
  0x1f   : > { %297 = vst [vmem:[#allocation1] ss:$2 sm:$0xff] %v295_v0  ;;  %v411_v12 = vmul.f32 %v409_v11, %v295_v0  ;;  %v1472_v45 = vld [vmem:[%s1984_s4 + $0x5] ss:$8 sm:$0x3]  ;;  %vm308_vm6 = vcmp.lt.s32.totalorder %v1787_v27, 17 }
  0x20   : > { %v435_v48 = vperm.slane %v1472_v45, 0  ;;  %v436_v49 = vperm.slane %v1472_v45, 1  ;;  %v1473_v61 = vld [vmem:[%s1984_s4 + $0x6] ss:$8 sm:$0x3]  ;;  %vm510_vm7 = vcmp.lt.s32.totalorder %v1787_v27, 111 }
  0x21   : > { %v464_v62 = vperm.slane %v1473_v61, 0  ;;  %v465_v63 = vperm.slane %v1473_v61, 1  ;;  %v1474_v7 = vld [vmem:[%s1984_s4 + $0x7] ss:$8 sm:$0x3]  ;;  %vm359_vm8 = vcmp.lt.s32.totalorder %v1787_v27, 15 }
  0x22   : > { %v487_v8 = vperm.slane %v1474_v7, 0  ;;  %v1469_v41 = vld [vmem:[%s1984_s4 + $0x2] ss:$8 sm:$0x3]  ;;  %v545_v61 = vld [vmem:[%s1982_s2 + $0x18] sm:$0xff]  ;;  %s1020_s30 = sld [smem:[#allocation3]] }
  0x23   : > { %v546_v45 = vld [vmem:[%s1982_s2 + $0x20] sm:$0xff]  ;;  %s287_s9 = sand.u32 1, %s1653_s27   ;;  %vm1357_vm12 = vcmask 1040384   ;;  %vm1361_vm13 = vcmask 1041408   ;;  %vm1363_vm14 = vcmask 1044484   ;;  %vm1365_vm15 = vcmask 1046534  }
  0x24   : > { %s1615_s25 = scalar_lea.hbm %s1987_s7, 16 }
  0x26   : > { %v298_v1 = vld.sshfl [vmem:[#allocation1] sm:$0xff pattern:$0x75316420]  ;;  %v299_v2 = vld.sshfl [vmem:[#allocation1 + $0x8] sm:$0xff pattern:$0x75316420] }
  0x27   : > { %321 = vst [vmem:[#allocation1] ss:$2 sm:$0xff] %v295_v0 }
  0x2e   : > { %v322_v4 = vld.sshfl [vmem:[#allocation1] sm:$0xff pattern:$0x75316420]  ;;  %v323_v5 = vld.sshfl [vmem:[#allocation1 + $0x8] sm:$0xff pattern:$0x75316420] }
  0x2f   : > { %350 = vst [vmem:[#allocation1] ss:$2 sm:$0xff] %v295_v0  ;;  %326 = vrot.lane.b32.xlu1 %v322_v4, %s1666_s10  ;;  %328 = vrot.lane.b32.xlu2 %v323_v5, %s1666_s10  ;;  %s1941_s10 = sshll.u32 %s287_s9, 3 }
  0x36   : > { %v351_v9 = vld.sshfl [vmem:[#allocation1] sm:$0xff pattern:$0x75316420]  ;;  %v352_v10 = vld.sshfl [vmem:[#allocation1 + $0x8] sm:$0xff pattern:$0x75316420] }
  0x37   : > { %355 = vrot.lane.b32.xlu0 %v351_v9, %s1667_s14  ;;  %373 = vst [vmem:[#allocation1] ss:$2 sm:$0xff] %v295_v0  ;;  %v488_v9 = vperm.slane %v1474_v7, 1 }
  0x3e   : > { %v374_v13 = vld.sshfl [vmem:[#allocation1] sm:$0xff pattern:$0x75316420]  ;;  %v375_v14 = vld.sshfl [vmem:[#allocation1 + $0x8] sm:$0xff pattern:$0x75316420] }
  0x3f   : > { %380 = vrot.lane.b32.xlu0 %v375_v14, %s1668_s15  ;;  %413 = vst [vmem:[#allocation1] ss:$2 sm:$0xff] %v411_v12  ;;  %378 = vrot.lane.b32.xlu2 %v374_v13, %s1668_s15  ;;  %v547_v12 = vld [vmem:[%s1982_s2 + $0x28] sm:$0xff] }
  0x46   : > { %v414_v15 = vld.sshfl [vmem:[#allocation1] sm:$0xff pattern:$0x75316420]  ;;  %v415_v16 = vld.sshfl [vmem:[#allocation1 + $0x8] sm:$0xff pattern:$0x75316420] }
  0x47   : > { %420 = vst [vmem:[#allocation1] ss:$2 sm:$0xff] %v295_v0 }
  0x48   : > { %418 = vst [vmem:[#allocation2 + $0x48] sm:$0xf] %v414_v15  ;;  %v1674_v15 = vmov 0  }
  0x49   : > { %419 = vst [vmem:[#allocation2 + $0x28] sm:$0xf] %v415_v16  ;;  %1564 = vset.pattern.permute.xlu0 %v1674_v15  ;;  %1562 = vset.pattern.permute.xlu1 %v1674_v15 }
  0x4a   : > { %1563 = vset.pattern.permute.xlu2 %v1674_v15 }
  0x4e   : > { %v421_v17 = vld.sshfl [vmem:[#allocation1] sm:$0xff pattern:$0x75316420]  ;;  %v422_v18 = vld.sshfl [vmem:[#allocation1 + $0x8] sm:$0xff pattern:$0x75316420] }
  0x4f   : > { %449 = vst [vmem:[#allocation1] ss:$2 sm:$0xff] %v295_v0  ;;  %425 = vrot.lane.b32.xlu2 %v421_v17, %s1669_s16 }
  0x56   : > { %v450_v19 = vld.sshfl [vmem:[#allocation1] sm:$0xff pattern:$0x75316420]  ;;  %v451_v20 = vld.sshfl [vmem:[#allocation1 + $0x8] sm:$0xff pattern:$0x75316420] }
  0x57   : > { %454 = vrot.lane.b32.xlu0 %v450_v19, %s1670_s17  ;;  %456 = vrot.lane.b32.xlu1 %v451_v20, %s1670_s17  ;;  %472 = vst [vmem:[#allocation1] ss:$2 sm:$0xff] %v295_v0  ;;  %v1475_v19 = vld [vmem:[%s1984_s4 + $0x10] ss:$8 sm:$0x3] }
  0x58   : > { %427 = vrot.lane.b32.xlu2 %v422_v18, %s1669_s16  ;;  %v311_v18 = vld [vmem:[%s1984_s4] ss:$8 sm:$0x3]  ;;  %v517_v26 = vperm.slane %v1475_v19, 1 }
  0x5e   : > { %v473_v21 = vld.sshfl [vmem:[#allocation1] sm:$0xff pattern:$0x75316420]  ;;  %v474_v22 = vld.sshfl [vmem:[#allocation1 + $0x8] sm:$0xff pattern:$0x75316420] }
  0x5f   : > { %477 = vrot.lane.b32.xlu0 %v473_v21, %s1671_s18  ;;  %501 = vst [vmem:[#allocation1] ss:$2 sm:$0xff] %v295_v0 }
  0x60   : > { %302 = vrot.lane.b32.xlu2 %v298_v1, %s1672_s19 }
  0x66   : > { %v502_v23 = vld.sshfl [vmem:[#allocation1] sm:$0xff pattern:$0x75316420]  ;;  %v503_v24 = vld.sshfl [vmem:[#allocation1 + $0x8] sm:$0xff pattern:$0x75316420] }
  0x67   : > { %479 = vrot.lane.b32.xlu0 %v474_v22, %s1671_s18  ;;  %506 = vrot.lane.b32.xlu1 %v502_v23, %s1673_s20  ;;  %v313_v23 = vperm.slane %v311_v18, 0 }
  0x6f   : > { %304 = vrot.lane.b32.xlu0 %v299_v2, %s1672_s19  ;;  %508 = vrot.lane.b32.xlu1 %v503_v24, %s1673_s20  ;;  %v314_v24 = vperm.slane %v311_v18, 1  ;;  %s1373_s20 = scalar_lea.sflag [#allocation6], %s287_s9 }
  0x77   : > { %357 = vrot.lane.b32.xlu1 %v352_v10, %s1667_s14  ;;  %577 = vperm.xlu0 %1564, %v547_v12   ;;  %s1497_s14 = sshll.u32 %s1739_s6, 3  ;;  %s289_s6 = scalar_lea.vmem [#allocation7], %s1941_s10 }
  0x78   : > { %s1383_s17 = scalar_lea.hbm %s1987_s7, %s1497_s14  ;;  %s1385_s18 = sshll.u32 %s289_s6, 4  ;;  %s1386_s18 = int_to_ptr.vmem [resolvable:$true] %s1385_s18 }
  0x79   : > { %s1387_s19 = sshll.u32 %s1383_s17, 4  ;;  %s1388_s19 = int_to_ptr.hbm [resolvable:$true] %s1387_s19 }
  0x7a   : > { %s1609_s21 = sshra.s32 %s1388_s19, 4  ;;  %s1610_s21 = int_to_ptr.hbm [resolvable:$true] %s1609_s21 }
  0x7b   : > { %s1611_s22 = scalar_lea.hbm %s1610_s21, 8  ;;  %p1616_p3 = scmp.lt.s32.totalorder %s1610_s21, %s1987_s7 }
  0x7c   : > { %p1612_p0 = scmp.ne.s32.totalorder %s1610_s21, %s1611_s22  ;;  %p1617_p4 = scmp.lt.s32.totalorder %s1615_s25, %s1611_s22 }
  0x7e   : > { %p1613_p1 = pnand %p1612_p0, %p1756_p5  ;;  %p1618_p7 = por %p1617_p4, %p1616_p3 }
  0x80   : > { %p1614_p2 = pneg %p1613_p1 }
  0x82   : > { %p1619_p8 = pnand %p1618_p7, %p1614_p2 }
  0x89   : > { %v329_v25 = vpop.permute.xlu2 %328 }
  0x99   : > { %v379_v31 = vpop.permute.xlu2 %378 }
  0xa1   : > { %v327_v32 = vpop.permute.xlu1 %326 }
  0xa2   : > { %v331_v33 = vsel %vm330_vm1, %v327_v32, %v329_v25  ;;  %v332_v34 = vsel %vm330_vm1, %v329_v25, %v327_v32  ;;  %v516_v25 = vperm.slane %v1475_v19, 0  ;;  %vm1367_vm1 = vcmask 1045508  }
  0xa3   : > { %v340_v35 = vmul.f32 %v336_v29, %v332_v34  ;;  %v341_v36 = vmul.f32 %v337_v30, %v331_v33  ;;  %v542_v30 = vld [vmem:[%s1982_s2] sm:$0xff] }
  0xa4   : > { %552 = vperm.xlu0 %1564, %v542_v30   ;;  %v861_v30 = vld [vmem:[#allocation4 + $0x308] sm:$0xff] }
  0xa5   : > { %v344_v37 = vrot.slane %v340_v35, 4  ;;  %v345_v38 = vrot.slane %v341_v36, 4 }
  0xa7   : > { %348 = vst [vmem:[#allocation2 + $0x30] sm:$0xf0] %v344_v37 }
  0xa8   : > { %349 = vst [vmem:[#allocation2] sm:$0xf0] %v345_v38 }
  0xa9   : > { %v1793_v39 = vpop.permute.xlu0 %355  ;;  %v426_v40 = vpop.permute.xlu2 %425 }
  0xb1   : > { %v381_v44 = vpop.permute.xlu0 %380 }
  0xb2   : > { %v383_v46 = vsel %vm382_vm2, %v379_v31, %v381_v44  ;;  %v384_v47 = vsel %vm382_vm2, %v381_v44, %v379_v31  ;;  %v428_v50 = vpop.permute.xlu2 %427  ;;  %v549_v31 = vld [vmem:[%s1982_s2 + $0x38] sm:$0xff] }
  0xb3   : > { %v392_v51 = vmul.f32 %v388_v42, %v384_v47  ;;  %v393_v52 = vmul.f32 %v389_v43, %v383_v46  ;;  %v430_v53 = vsel %vm429_vm3, %v426_v40, %v428_v50  ;;  %v431_v54 = vsel %vm429_vm3, %v428_v50, %v426_v40  ;;  %587 = vperm.xlu1 %1562, %v549_v31   ;;  %v989_v31 = vld [vmem:[#allocation4 + $0x708] sm:$0xff] }
  0xb4   : > { %v439_v55 = vmul.f32 %v435_v48, %v430_v53  ;;  %v440_v56 = vmul.f32 %v436_v49, %v431_v54  ;;  %v365_v42 = vperm.slane %v1469_v41, 0  ;;  %v366_v43 = vperm.slane %v1469_v41, 1  ;;  %v548_v53 = vld [vmem:[%s1982_s2 + $0x30] sm:$0xff] }
  0xb5   : > { %v396_v57 = vrot.slane %v392_v51, 4  ;;  %v397_v58 = vrot.slane %v393_v52, 4  ;;  %582 = vperm.xlu2 %1563, %v548_v53  }
  0xb6   : > { %v443_v59 = vrot.slane %v439_v55, 4  ;;  %v444_v60 = vrot.slane %v440_v56, 4 }
  0xb7   : > { %400 = vst [vmem:[#allocation2 + $0x18] sm:$0xf0] %v396_v57 }
  0xb8   : > { %401 = vst [vmem:[#allocation2 + $0x10] sm:$0xf0] %v397_v58  ;;  %v524_v58 = vld [vmem:[%s1981_s1] sm:$0xff] }
  0xb9   : > { %447 = vst [vmem:[#allocation2 + $0x48] sm:$0xf0] %v443_v59 }
  0xba   : > { %448 = vst [vmem:[#allocation2 + $0x28] sm:$0xf0] %v444_v60  ;;  %v303_v22 = vpop.permute.xlu2 %302 }
  0xbb   : > { %572 = vperm.xlu1 %1562, %v546_v45   ;;  %v837_v45 = vld [vmem:[#allocation4 + $0x248] sm:$0xff] }
  0xbd   : > { %567 = vperm.xlu2 %1563, %v545_v61  }
  0xc0   : > { %v536_v54 = vld [vmem:[#allocation2 + $0x48] sm:$0xff] }
  0xc1   : > { %v537_v55 = vld [vmem:[#allocation2 + $0x28] sm:$0xff] }
  0xc9   : > { %v455_v0 = vpop.permute.xlu0 %454  ;;  %v457_v1 = vpop.permute.xlu1 %456 }
  0xca   : > { %v459_v2 = vsel %vm458_vm4, %v455_v0, %v457_v1  ;;  %v460_v3 = vsel %vm458_vm4, %v457_v1, %v455_v0  ;;  %v526_v0 = vld [vmem:[%s1981_s1 + $0x10] sm:$0xff]  ;;  %v527_v1 = vld [vmem:[%s1981_s1 + $0x18] sm:$0xff] }
  0xcb   : > { %v468_v4 = vmul.f32 %v464_v62, %v459_v2  ;;  %v469_v5 = vmul.f32 %v465_v63, %v460_v3  ;;  %v525_v62 = vld [vmem:[%s1981_s1 + $0x8] sm:$0xff]  ;;  %v528_v2 = vld [vmem:[%s1981_s1 + $0x20] sm:$0xff] }
  0xcc   : > { %v543_v63 = vld [vmem:[%s1982_s2 + $0x8] sm:$0xff] }
  0xcd   : > { %470 = vst [vmem:[#allocation2 + $0x8] sm:$0xf] %v468_v4  ;;  %557 = vperm.xlu2 %1563, %v543_v63   ;;  %v529_v3 = vld [vmem:[%s1981_s1 + $0x28] sm:$0xff]  ;;  %v530_v4 = vld [vmem:[%s1981_s1 + $0x30] sm:$0xff]  ;;  %v813_v63 = vld [vmem:[#allocation4 + $0x188] sm:$0xff] }
  0xce   : > { %471 = vst [vmem:[#allocation2 + $0x20] sm:$0xf] %v469_v5  ;;  %v531_v5 = vld [vmem:[%s1981_s1 + $0x38] sm:$0xff] }
  0xd1   : > { %v478_v6 = vpop.permute.xlu0 %477 }
  0xd9   : > { %v480_v10 = vpop.permute.xlu0 %479  ;;  %v507_v11 = vpop.permute.xlu1 %506 }
  0xda   : > { %v482_v13 = vsel %vm481_vm5, %v478_v6, %v480_v10  ;;  %v483_v14 = vsel %vm481_vm5, %v480_v10, %v478_v6 }
  0xdb   : > { %v491_v16 = vmul.f32 %v487_v8, %v482_v13  ;;  %v492_v17 = vmul.f32 %v488_v9, %v483_v14 }
  0xdd   : > { %v495_v20 = vrot.slane %v491_v16, 4  ;;  %v496_v21 = vrot.slane %v492_v17, 4 }
  0xdf   : > { %499 = vst [vmem:[#allocation2 + $0x8] sm:$0xf0] %v495_v20  ;;  %v885_v20 = vld [vmem:[#allocation4 + $0x3c8] sm:$0xff] }
  0xe0   : > { %500 = vst [vmem:[#allocation2 + $0x20] sm:$0xf0] %v496_v21  ;;  %v1013_v21 = vld [vmem:[#allocation4 + $0x7c8] sm:$0xff] }
  0xe1   : > { %v305_v28 = vpop.permute.xlu0 %304  ;;  %v509_v29 = vpop.permute.xlu1 %508 }
  0xe2   : > { %v309_v32 = vsel %vm308_vm6, %v303_v22, %v305_v28  ;;  %v310_v33 = vsel %vm308_vm6, %v305_v28, %v303_v22  ;;  %v511_v34 = vsel %vm510_vm7, %v507_v11, %v509_v29  ;;  %v512_v35 = vsel %vm510_vm7, %v509_v29, %v507_v11  ;;  %v997_v28 = vld [vmem:[#allocation4 + $0x748] sm:$0xff] }
  0xe3   : > { %v317_v36 = vmul.f32 %v313_v23, %v310_v33  ;;  %v318_v37 = vmul.f32 %v314_v24, %v309_v32  ;;  %v520_v38 = vmul.f32 %v516_v25, %v511_v34  ;;  %v521_v40 = vmul.f32 %v517_v26, %v512_v35  ;;  %v877_v23 = vld [vmem:[#allocation4 + $0x388] sm:$0xff] }
  0xe4   : > { %v1005_v24 = vld [vmem:[#allocation4 + $0x788] sm:$0xff] }
  0xe5   : > { %319 = vst [vmem:[#allocation2 + $0x30] sm:$0xf] %v317_v36  ;;  %v869_v26 = vld [vmem:[#allocation4 + $0x348] sm:$0xff] }
  0xe6   : > { %320 = vst [vmem:[#allocation2] sm:$0xf] %v318_v37  ;;  %v538_v51 = vld [vmem:[#allocation2 + $0x8] sm:$0xff]  ;;  %v853_v33 = vld [vmem:[#allocation4 + $0x2c8] sm:$0xff] }
  0xe7   : > { %522 = vst [vmem:[#allocation2 + $0x40] sm:$0xf] %v520_v38  ;;  %v539_v52 = vld [vmem:[#allocation2 + $0x20] sm:$0xff]  ;;  %v981_v34 = vld [vmem:[#allocation4 + $0x6c8] sm:$0xff] }
  0xe8   : > { %523 = vst [vmem:[#allocation2 + $0x38] sm:$0xf] %v521_v40  ;;  %v845_v37 = vld [vmem:[#allocation4 + $0x288] sm:$0xff] }
  0xe9   : > { %v358_v44 = vpop.permute.xlu1 %357  ;;  %v578_v35 = vpop.permute.xlu0 %577  ;;  %v973_v38 = vld [vmem:[#allocation4 + $0x688] sm:$0xff] }
  0xea   : > { %v360_v46 = vsel %vm359_vm8, %v1793_v39, %v358_v44  ;;  %v361_v47 = vsel %vm359_vm8, %v358_v44, %v1793_v39  ;;  %v544_v39 = vld [vmem:[%s1982_s2 + $0x10] sm:$0xff] }
  0xeb   : > { %v369_v48 = vmul.f32 %v365_v42, %v361_v47  ;;  %v370_v49 = vmul.f32 %v366_v43, %v360_v46  ;;  %562 = vperm.xlu1 %1562, %v544_v39   ;;  %v965_v46 = vld [vmem:[#allocation4 + $0x648] sm:$0xff] }
  0xec   : > { %v532_v59 = vld [vmem:[#allocation2 + $0x30] sm:$0xff] }
  0xed   : > { %371 = vst [vmem:[#allocation2 + $0x18] sm:$0xf] %v369_v48  ;;  %v533_v60 = vld [vmem:[#allocation2] sm:$0xff] }
  0xee   : > { %372 = vst [vmem:[#allocation2 + $0x10] sm:$0xf] %v370_v49  ;;  %v540_v50 = vld [vmem:[#allocation2 + $0x40] sm:$0xf] }
  0xef   : > { %1476 = vmatpush.msk.msra.mxu0 %vm408_vm0, %v540_v50  ;;  %v541_v27 = vld [vmem:[#allocation2 + $0x38] sm:$0xf] }
  0xf0   : > { %1485 = vmatpush.msk.msra.mxu1 %vm408_vm0, %v541_v27  ;;  %v829_v27 = vld [vmem:[#allocation4 + $0x208] sm:$0xff] }
  0xf1   : > { %633 = vmatpush.msra.mxu0 %v538_v51  ;;  %v957_v51 = vld [vmem:[#allocation4 + $0x608] sm:$0xff] }
  0xf2   : > { %674 = vmatpush.msra.mxu1 %v539_v52 }
  0xf3   : > { %634 = vmatpush.msra.mxu0 %v536_v54 }
  0xf4   : > { %675 = vmatpush.msra.mxu1 %v537_v55  ;;  %v534_v56 = vld [vmem:[#allocation2 + $0x18] sm:$0xff] }
  0xf5   : > { %635 = vmatpush.msra.mxu0 %v534_v56  ;;  %v535_v57 = vld [vmem:[#allocation2 + $0x10] sm:$0xff]  ;;  %v821_v56 = vld [vmem:[#allocation4 + $0x1c8] sm:$0xff] }
  0xf6   : > { %676 = vmatpush.msra.mxu1 %v535_v57  ;;  %v949_v57 = vld [vmem:[#allocation4 + $0x5c8] sm:$0xff] }
  0xf7   : > { %636 = vmatpush.msra.mxu0 %v532_v59 }
  0xf8   : > { %677 = vmatpush.msra.mxu1 %v533_v60  ;;  %1477 = vmatmul.msk.f32.vlgmr.msra.gmra.mxu0 %vm590_vm9, %v524_v58 }
  0xf9   : > { %1486 = vmatmul.msk.f32.vlgmr.msra.gmra.mxu1 %vm590_vm9, %v524_v58  ;;  %1062 = vmatpush.msrb.mxu0 %v885_v20 }
  0xfa   : > { %1082 = vmatpush.msrb.mxu1 %v1013_v21 }
  0xfb   : > { %1063 = vmatpush.msrb.mxu0 %v877_v23 }
  0xfc   : > { %1083 = vmatpush.msrb.mxu1 %v1005_v24  ;;  %v781_v24 = vld [vmem:[#allocation4 + $0x88] sm:$0xff] }
  0xfd   : > { %1064 = vmatpush.msrb.mxu0 %v869_v26 }
  0xfe   : > { %1084 = vmatpush.msrb.mxu1 %v997_v28  ;;  %v884_v28 = vld [vmem:[#allocation4 + $0x3c0] sm:$0xff] }
  0xff   : > { %1065 = vmatpush.msrb.mxu0 %v861_v30  ;;  %v1012_v30 = vld [vmem:[#allocation4 + $0x7c0] sm:$0xff] }
 0x100   : > { %1478 = vmatmul.msk.f32.gmra.mxu0 %vm590_vm9, %v525_v62  ;;  %1085 = vmatpush.msrb.mxu1 %v989_v31  ;;  %v901_v31 = vld [vmem:[#allocation4 + $0x448] sm:$0xff] }
 0x101   : > { %1487 = vmatmul.msk.f32.gmra.mxu1 %vm590_vm9, %v525_v62  ;;  %1066 = vmatpush.msrb.mxu0 %v853_v33  ;;  %v765_v33 = vld [vmem:[#allocation4 + $0x8] sm:$0xff] }
 0x102   : > { %1086 = vmatpush.msrb.mxu1 %v981_v34  ;;  %v1004_v34 = vld [vmem:[#allocation4 + $0x780] sm:$0xff] }
 0x103   : > { %1067 = vmatpush.msrb.mxu0 %v845_v37  ;;  %v887_v37 = vld [vmem:[#allocation4 + $0x3d8] sm:$0xff] }
 0x104   : > { %1087 = vmatpush.msrb.mxu1 %v973_v38  ;;  %v996_v38 = vld [vmem:[#allocation4 + $0x740] sm:$0xff] }
 0x105   : > { %1068 = vmatpush.msrb.mxu0 %v837_v45  ;;  %v852_v45 = vld [vmem:[#allocation4 + $0x2c0] sm:$0xff] }
 0x106   : > { %1088 = vmatpush.msrb.mxu1 %v965_v46  ;;  %v871_v46 = vld [vmem:[#allocation4 + $0x358] sm:$0xff] }
 0x107   : > { %1069 = vmatpush.msrb.mxu0 %v829_v27  ;;  %v972_v27 = vld [vmem:[#allocation4 + $0x680] sm:$0xff] }
 0x108   : > { %1479 = vmatmul.msk.f32.gmra.mxu0 %vm590_vm9, %v526_v0  ;;  %1089 = vmatpush.msrb.mxu1 %v957_v51  ;;  %v991_v51 = vld [vmem:[#allocation4 + $0x718] sm:$0xff] }
 0x109   : > { %1488 = vmatmul.msk.f32.gmra.mxu1 %vm590_vm9, %v526_v0  ;;  %1070 = vmatpush.msrb.mxu0 %v821_v56  ;;  %v941_v0 = vld [vmem:[#allocation4 + $0x588] sm:$0xff]  ;;  %v847_v56 = vld [vmem:[#allocation4 + $0x298] sm:$0xff] }
 0x10a   : > { %1090 = vmatpush.msrb.mxu1 %v949_v57  ;;  %v956_v57 = vld [vmem:[#allocation4 + $0x600] sm:$0xff] }
 0x10b   : > { %1071 = vmatpush.msrb.mxu0 %v813_v63  ;;  %v812_v63 = vld [vmem:[#allocation4 + $0x180] sm:$0xff] }
 0x10c   : > { %1091 = vmatpush.msrb.mxu1 %v941_v0  ;;  %v831_v0 = vld [vmem:[#allocation4 + $0x218] sm:$0xff] }
 0x10f   : > { %v583_v19 = vpop.permute.xlu2 %582 }
 0x110   : > { %1480 = vmatmul.msk.f32.gmra.mxu0 %vm590_vm9, %v527_v1 }
 0x111   : > { %1489 = vmatmul.msk.f32.gmra.mxu1 %vm590_vm9, %v527_v1 }
 0x117   : > { %v568_v32 = vpop.permute.xlu2 %567 }
 0x118   : > { %1481 = vmatmul.msk.f32.gmra.mxu0 %vm590_vm9, %v528_v2 }
 0x119   : > { %1490 = vmatmul.msk.f32.gmra.mxu1 %vm590_vm9, %v528_v2 }
 0x120   : > { %1482 = vmatmul.msk.f32.gmra.mxu0 %vm590_vm9, %v529_v3 }
 0x121   : > { %1491 = vmatmul.msk.f32.gmra.mxu1 %vm590_vm9, %v529_v3  ;;  %v553_v3 = vpop.permute.xlu0 %552 }
 0x125   : > { %v588_v18 = vpop.permute.xlu1 %587 }
 0x127   : > { %v558_v60 = vpop.permute.xlu2 %557 }
 0x128   : > { %1483 = vmatmul.msk.f32.gmra.mxu0 %vm590_vm9, %v530_v4 }
 0x129   : > { %1492 = vmatmul.msk.f32.gmra.mxu1 %vm590_vm9, %v530_v4 }
 0x12d   : > { %v573_v29 = vpop.permute.xlu1 %572 }
 0x130   : > { %1484 = vmatmul.msk.f32.gmra.mxu0 %vm590_vm9, %v531_v5 }
 0x131   : > { %1493 = vmatmul.msk.f32.gmra.mxu1 %vm590_vm9, %v531_v5 }
 0x15d   : > { %v563_v39 = vpop.permute.xlu1 %562 }
 0x175   : > { %v1891_v6 = vpop.f32.mrf.mxu0 }
 0x176   : > { %v1893_v7 = vpop.f32.mrf.mxu1 }
 0x177   : > { %v680_v20 = vadd.f32 %v1893_v7, %v553_v3 }
 0x179   : > { %v704_v7 = vmax.f32 %v680_v20, 0.0  ;;  %v799_v20 = vld [vmem:[#allocation4 + $0x118] sm:$0xff] }
 0x17d   : > { %v1895_v8 = vpop.f32.mrf.mxu0 }
 0x17e   : > { %v1897_v9 = vpop.f32.mrf.mxu1 }
 0x185   : > { %v1899_v10 = vpop.f32.mrf.mxu0 }
 0x186   : > { %v1901_v11 = vpop.f32.mrf.mxu1  ;;  %v645_v1 = vadd.f32 %v1899_v10, %v563_v39  ;;  %v797_v10 = vld [vmem:[#allocation4 + $0x108] sm:$0xff] }
 0x187   : > { %v686_v4 = vadd.f32 %v1901_v11, %v563_v39  ;;  %v964_v39 = vld [vmem:[#allocation4 + $0x640] sm:$0xff] }
 0x188   : > { %v707_v11 = vmax.f32 %v645_v1, 0.0  ;;  %v940_v1 = vld [vmem:[#allocation4 + $0x580] sm:$0xff] }
 0x189   : > { %v708_v21 = vmax.f32 %v686_v4, 0.0  ;;  %v823_v4 = vld [vmem:[#allocation4 + $0x1d8] sm:$0xff] }
 0x18d   : > { %v1903_v12 = vpop.f32.mrf.mxu0 }
 0x18e   : > { %v1905_v13 = vpop.f32.mrf.mxu1  ;;  %v648_v58 = vadd.f32 %v1903_v12, %v568_v32  ;;  %v805_v12 = vld [vmem:[#allocation4 + $0x148] sm:$0xff] }
 0x18f   : > { %v689_v61 = vadd.f32 %v1905_v13, %v568_v32  ;;  %v642_v13 = vadd.f32 %v1895_v8, %v558_v60  ;;  %1072 = vmatpush.msrb.mxu0 %v805_v12  ;;  %v789_v8 = vld [vmem:[#allocation4 + $0xc8] sm:$0xff]  ;;  %v876_v32 = vld [vmem:[#allocation4 + $0x380] sm:$0xff]  ;;  %v951_v12 = vld [vmem:[#allocation4 + $0x5d8] sm:$0xff] }
 0x191   : > { %1073 = vmatpush.msrb.mxu0 %v797_v10  ;;  %v705_v23 = vmax.f32 %v642_v13, 0.0  ;;  %v815_v13 = vld [vmem:[#allocation4 + $0x198] sm:$0xff] }
 0x192   : > { %v807_v10 = vld [vmem:[#allocation4 + $0x158] sm:$0xff] }
 0x193   : > { %1074 = vmatpush.msrb.mxu0 %v789_v8  ;;  %v927_v8 = vld [vmem:[#allocation4 + $0x518] sm:$0xff] }
 0x195   : > { %v650_v14 = vpop.f32.mrf.mxu0  ;;  %1075 = vmatpush.msrb.mxu0 %v781_v24  ;;  %v919_v24 = vld [vmem:[#allocation4 + $0x4d8] sm:$0xff] }
 0x196   : > { %v691_v15 = vpop.f32.mrf.mxu1  ;;  %v651_v52 = vadd.f32 %v650_v14, %v573_v29  ;;  %v933_v14 = vld [vmem:[#allocation4 + $0x548] sm:$0xff] }
 0x197   : > { %v692_v54 = vadd.f32 %v691_v15, %v573_v29  ;;  %v709_v15 = vmax.f32 %v648_v58, 0.0  ;;  %1092 = vmatpush.msrb.mxu1 %v933_v14  ;;  %v773_v29 = vld [vmem:[#allocation4 + $0x48] sm:$0xff]  ;;  %v975_v58 = vld [vmem:[#allocation4 + $0x698] sm:$0xff]  ;;  %v796_v14 = vld [vmem:[#allocation4 + $0x100] sm:$0xff] }
 0x198   : > { %v711_v2 = vmax.f32 %v651_v52, 0.0  ;;  %1076 = vmatpush.msrb.mxu0 %v773_v29  ;;  %v836_v52 = vld [vmem:[#allocation4 + $0x240] sm:$0xff]  ;;  %v911_v29 = vld [vmem:[#allocation4 + $0x498] sm:$0xff] }
 0x199   : > { %v712_v5 = vmax.f32 %v692_v54, 0.0  ;;  %v983_v54 = vld [vmem:[#allocation4 + $0x6d8] sm:$0xff] }
 0x19a   : > { %1077 = vmatpush.msrb.mxu0 %v765_v33  ;;  %v903_v33 = vld [vmem:[#allocation4 + $0x458] sm:$0xff] }
 0x19c   : > { %1142 = vmatpush.msra.mxu0 %v887_v37  ;;  %v990_v37 = vld [vmem:[#allocation4 + $0x710] sm:$0xff] }
 0x19d   : > { %v653_v16 = vpop.f32.mrf.mxu0 }
 0x19e   : > { %v694_v17 = vpop.f32.mrf.mxu1  ;;  %v654_v47 = vadd.f32 %v653_v16, %v578_v35  ;;  %v683_v16 = vadd.f32 %v1897_v9, %v558_v60  ;;  %v839_v60 = vld [vmem:[#allocation4 + $0x258] sm:$0xff] }
 0x19f   : > { %v695_v49 = vadd.f32 %v694_v17, %v578_v35  ;;  %v710_v17 = vmax.f32 %v689_v61, 0.0  ;;  %v893_v35 = vld [vmem:[#allocation4 + $0x408] sm:$0xff]  ;;  %v948_v61 = vld [vmem:[#allocation4 + $0x5c0] sm:$0xff] }
 0x1a0   : > { %v713_v59 = vmax.f32 %v654_v47, 0.0  ;;  %v706_v9 = vmax.f32 %v683_v16, 0.0  ;;  %v980_v47 = vld [vmem:[#allocation4 + $0x6c0] sm:$0xff]  ;;  %v943_v16 = vld [vmem:[#allocation4 + $0x598] sm:$0xff] }
 0x1a1   : > { %v714_v62 = vmax.f32 %v695_v49, 0.0  ;;  %v844_v49 = vld [vmem:[#allocation4 + $0x280] sm:$0xff] }
 0x1a5   : > { %v656_v22 = vpop.f32.mrf.mxu0 }
 0x1a6   : > { %v697_v25 = vpop.f32.mrf.mxu1  ;;  %v657_v40 = vadd.f32 %v656_v22, %v583_v19  ;;  %v917_v22 = vld [vmem:[#allocation4 + $0x4c8] sm:$0xff] }
 0x1a7   : > { %v698_v43 = vadd.f32 %v697_v25, %v583_v19  ;;  %v639_v19 = vadd.f32 %v1891_v6, %v553_v3  ;;  %v909_v25 = vld [vmem:[#allocation4 + $0x488] sm:$0xff]  ;;  %v804_v3 = vld [vmem:[#allocation4 + $0x140] sm:$0xff] }
 0x1a8   : > { %v715_v53 = vmax.f32 %v657_v40, 0.0  ;;  %v719_v6 = vld [vmem:[%s1983_s3] sm:$0x1]  ;;  %v1015_v40 = vld [vmem:[#allocation4 + $0x7d8] sm:$0xff] }
 0x1a9   : > { %v716_v55 = vmax.f32 %v698_v43, 0.0  ;;  %v703_v26 = vmax.f32 %v639_v19, 0.0  ;;  %v988_v43 = vld [vmem:[#allocation4 + $0x700] sm:$0xff]  ;;  %v935_v19 = vld [vmem:[#allocation4 + $0x558] sm:$0xff] }
 0x1ad   : > { %v659_v36 = vpop.f32.mrf.mxu0 }
 0x1ae   : > { %v700_v41 = vpop.f32.mrf.mxu1  ;;  %v660_v42 = vadd.f32 %v659_v36, %v588_v18  ;;  %v868_v36 = vld [vmem:[#allocation4 + $0x340] sm:$0xff] }
 0x1af   : > { %v701_v44 = vadd.f32 %v700_v41, %v588_v18  ;;  %v925_v18 = vld [vmem:[#allocation4 + $0x508] sm:$0xff]  ;;  %v860_v41 = vld [vmem:[#allocation4 + $0x300] sm:$0xff] }
 0x1b0   : > { %v717_v48 = vmax.f32 %v660_v42, 0.0  ;;  %1093 = vmatpush.msrb.mxu1 %v925_v18  ;;  %v879_v42 = vld [vmem:[#allocation4 + $0x398] sm:$0xff]  ;;  %v916_v18 = vld [vmem:[#allocation4 + $0x4c0] sm:$0xff] }
 0x1b1   : > { %v718_v50 = vmax.f32 %v701_v44, 0.0  ;;  %v1007_v44 = vld [vmem:[#allocation4 + $0x798] sm:$0xff]  ;;  %1143 = vmatpush.msra.mxu0 %v879_v42  ;;  %v974_v42 = vld [vmem:[#allocation4 + $0x690] sm:$0xff] }
 0x1b2   : > { %732 = vmatpush.msra.mxu2 %v717_v48  ;;  %1094 = vmatpush.msrb.mxu1 %v917_v22  ;;  %v999_v48 = vld [vmem:[#allocation4 + $0x758] sm:$0xff]  ;;  %v772_v22 = vld [vmem:[#allocation4 + $0x40] sm:$0xff] }
 0x1b3   : > { %752 = vmatpush.msra.mxu3 %v718_v50  ;;  %v863_v50 = vld [vmem:[#allocation4 + $0x318] sm:$0xff]  ;;  %1144 = vmatpush.msra.mxu0 %v871_v46  ;;  %v958_v46 = vld [vmem:[#allocation4 + $0x610] sm:$0xff] }
 0x1b4   : > { %733 = vmatpush.msra.mxu2 %v715_v53  ;;  %1095 = vmatpush.msrb.mxu1 %v909_v25  ;;  %v855_v53 = vld [vmem:[#allocation4 + $0x2d8] sm:$0xff]  ;;  %v764_v25 = vld [vmem:[#allocation4] sm:$0xff] }
 0x1b5   : > { %753 = vmatpush.msra.mxu3 %v716_v55  ;;  %1145 = vmatpush.msra.mxu0 %v863_v50  ;;  %v828_v55 = vld [vmem:[#allocation4 + $0x200] sm:$0xff]  ;;  %v942_v50 = vld [vmem:[#allocation4 + $0x590] sm:$0xff] }
 0x1b6   : > { %734 = vmatpush.msra.mxu2 %v713_v59  ;;  %1096 = vmatpush.msrb.mxu1 %v901_v31  ;;  %v820_v59 = vld [vmem:[#allocation4 + $0x1c0] sm:$0xff]  ;;  %v775_v31 = vld [vmem:[#allocation4 + $0x58] sm:$0xff] }
 0x1b7   : > { %754 = vmatpush.msra.mxu3 %v714_v62  ;;  %1146 = vmatpush.msra.mxu0 %v855_v53  ;;  %v967_v62 = vld [vmem:[#allocation4 + $0x658] sm:$0xff]  ;;  %v926_v53 = vld [vmem:[#allocation4 + $0x510] sm:$0xff] }
 0x1b8   : > { %735 = vmatpush.msra.mxu2 %v711_v2  ;;  %1097 = vmatpush.msrb.mxu1 %v893_v35  ;;  %v959_v2 = vld [vmem:[#allocation4 + $0x618] sm:$0xff]  ;;  %v998_v35 = vld [vmem:[#allocation4 + $0x750] sm:$0xff] }
 0x1b9   : > { %755 = vmatpush.msra.mxu3 %v712_v5  ;;  %1147 = vmatpush.msra.mxu0 %v847_v56  ;;  %v932_v5 = vld [vmem:[#allocation4 + $0x540] sm:$0xff]  ;;  %v910_v56 = vld [vmem:[#allocation4 + $0x490] sm:$0xff] }
 0x1ba   : > { %736 = vmatpush.msra.mxu2 %v709_v15  ;;  %1162 = vmatpush.msra.mxu1 %v1015_v40  ;;  %v924_v15 = vld [vmem:[#allocation4 + $0x500] sm:$0xff]  ;;  %v982_v40 = vld [vmem:[#allocation4 + $0x6d0] sm:$0xff] }
 0x1bb   : > { %756 = vmatpush.msra.mxu3 %v710_v17  ;;  %1148 = vmatpush.msra.mxu0 %v839_v60  ;;  %v788_v17 = vld [vmem:[#allocation4 + $0xc0] sm:$0xff]  ;;  %v894_v60 = vld [vmem:[#allocation4 + $0x410] sm:$0xff] }
 0x1bc   : > { %737 = vmatpush.msra.mxu2 %v707_v11  ;;  %1163 = vmatpush.msra.mxu1 %v1007_v44  ;;  %v780_v11 = vld [vmem:[#allocation4 + $0x80] sm:$0xff]  ;;  %v966_v44 = vld [vmem:[#allocation4 + $0x650] sm:$0xff] }
 0x1bd   : > { %757 = vmatpush.msra.mxu3 %v708_v21  ;;  %1149 = vmatpush.msra.mxu0 %v831_v0  ;;  %v908_v21 = vld [vmem:[#allocation4 + $0x480] sm:$0xff] }
 0x1be   : > { %738 = vmatpush.msra.mxu2 %v705_v23  ;;  %1164 = vmatpush.msra.mxu1 %v999_v48  ;;  %v791_v23 = vld [vmem:[#allocation4 + $0xd8] sm:$0xff]  ;;  %v950_v48 = vld [vmem:[#allocation4 + $0x5d0] sm:$0xff]  ;;  %v888_v0 = vld [vmem:[#allocation4 + $0x3e0] sm:$0xff] }
 0x1bf   : > { %758 = vmatpush.msra.mxu3 %v706_v9  ;;  %1150 = vmatpush.msra.mxu0 %v823_v4  ;;  %v900_v9 = vld [vmem:[#allocation4 + $0x440] sm:$0xff]  ;;  %v1017_v4 = vld [vmem:[#allocation4 + $0x7e8] sm:$0xff] }
 0x1c0   : > { %739 = vmatpush.msra.mxu2 %v703_v26  ;;  %1165 = vmatpush.msra.mxu1 %v991_v51  ;;  %v783_v26 = vld [vmem:[#allocation4 + $0x98] sm:$0xff]  ;;  %v934_v51 = vld [vmem:[#allocation4 + $0x550] sm:$0xff] }
 0x1c1   : > { %759 = vmatpush.msra.mxu3 %v704_v7  ;;  %1494 = vmatmul.msk.f32.vlgmr.msra.gmra.mxu2 %vm720_vm10, %v719_v6  ;;  %v886_v7 = vld [vmem:[#allocation4 + $0x3d0] sm:$0xff] }
 0x1c2   : > { %1495 = vmatmul.msk.f32.vlgmr.msra.gmra.mxu3 %vm720_vm10, %v719_v6  ;;  %1022 = vmatpush.msrb.mxu2 %v884_v28  ;;  %v892_v6 = vld [vmem:[#allocation4 + $0x400] sm:$0xff]  ;;  %v1014_v28 = vld [vmem:[#allocation4 + $0x7d0] sm:$0xff] }
 0x1c3   : > { %1042 = vmatpush.msrb.mxu3 %v1012_v30  ;;  %1166 = vmatpush.msra.mxu1 %v983_v54  ;;  %v878_v30 = vld [vmem:[#allocation4 + $0x390] sm:$0xff] }
 0x1c4   : > { %1023 = vmatpush.msrb.mxu2 %v876_v32  ;;  %1151 = vmatpush.msra.mxu0 %v815_v13  ;;  %v1006_v32 = vld [vmem:[#allocation4 + $0x790] sm:$0xff]  ;;  %v1009_v13 = vld [vmem:[#allocation4 + $0x7a8] sm:$0xff] }
 0x1c5   : > { %1043 = vmatpush.msrb.mxu3 %v1004_v34  ;;  %1167 = vmatpush.msra.mxu1 %v975_v58  ;;  %v870_v34 = vld [vmem:[#allocation4 + $0x350] sm:$0xff] }
 0x1c6   : > { %1024 = vmatpush.msrb.mxu2 %v868_v36  ;;  %1152 = vmatpush.msra.mxu0 %v807_v10  ;;  %v862_v36 = vld [vmem:[#allocation4 + $0x310] sm:$0xff]  ;;  %v1001_v10 = vld [vmem:[#allocation4 + $0x768] sm:$0xff] }
 0x1c7   : > { %1044 = vmatpush.msrb.mxu3 %v996_v38  ;;  %1168 = vmatpush.msra.mxu1 %v967_v62  ;;  %v854_v38 = vld [vmem:[#allocation4 + $0x2d0] sm:$0xff]  ;;  %v895_v62 = vld [vmem:[#allocation4 + $0x418] sm:$0xff] }
 0x1c8   : > { %1025 = vmatpush.msrb.mxu2 %v860_v41  ;;  %1153 = vmatpush.msra.mxu0 %v799_v20  ;;  %v846_v41 = vld [vmem:[#allocation4 + $0x290] sm:$0xff]  ;;  %v993_v20 = vld [vmem:[#allocation4 + $0x728] sm:$0xff] }
 0x1c9   : > { %1045 = vmatpush.msrb.mxu3 %v988_v43  ;;  %1169 = vmatpush.msra.mxu1 %v959_v2  ;;  %v838_v43 = vld [vmem:[#allocation4 + $0x250] sm:$0xff] }
 0x1ca   : > { %1026 = vmatpush.msrb.mxu2 %v852_v45  ;;  %1154 = vmatpush.msra.mxu0 %v791_v23  ;;  %v830_v45 = vld [vmem:[#allocation4 + $0x210] sm:$0xff]  ;;  %v985_v23 = vld [vmem:[#allocation4 + $0x6e8] sm:$0xff] }
 0x1cb   : > { %1046 = vmatpush.msrb.mxu3 %v980_v47  ;;  %1170 = vmatpush.msra.mxu1 %v951_v12  ;;  %v822_v47 = vld [vmem:[#allocation4 + $0x1d0] sm:$0xff]  ;;  %v1008_v12 = vld [vmem:[#allocation4 + $0x7a0] sm:$0xff] }
 0x1cc   : > { %1027 = vmatpush.msrb.mxu2 %v844_v49  ;;  %1155 = vmatpush.msra.mxu0 %v783_v26  ;;  %v814_v49 = vld [vmem:[#allocation4 + $0x190] sm:$0xff]  ;;  %v977_v26 = vld [vmem:[#allocation4 + $0x6a8] sm:$0xff] }
 0x1cd   : > { %1047 = vmatpush.msrb.mxu3 %v972_v27  ;;  %1171 = vmatpush.msra.mxu1 %v943_v16  ;;  %v806_v27 = vld [vmem:[#allocation4 + $0x150] sm:$0xff]  ;;  %v1000_v16 = vld [vmem:[#allocation4 + $0x760] sm:$0xff] }
 0x1ce   : > { %1028 = vmatpush.msrb.mxu2 %v836_v52  ;;  %1156 = vmatpush.msra.mxu0 %v775_v31  ;;  %v798_v52 = vld [vmem:[#allocation4 + $0x110] sm:$0xff]  ;;  %v960_v31 = vld [vmem:[#allocation4 + $0x620] sm:$0xff] }
 0x1cf   : > { %1048 = vmatpush.msrb.mxu3 %v964_v39  ;;  %1172 = vmatpush.msra.mxu1 %v935_v19  ;;  %v790_v39 = vld [vmem:[#allocation4 + $0xd0] sm:$0xff]  ;;  %v992_v19 = vld [vmem:[#allocation4 + $0x720] sm:$0xff] }
 0x1d0   : > { %1029 = vmatpush.msrb.mxu2 %v828_v55  ;;  %v918_v54 = vld [vmem:[#allocation4 + $0x4d0] sm:$0xff] }
 0x1d1   : > { %1049 = vmatpush.msrb.mxu3 %v956_v57  ;;  %1173 = vmatpush.msra.mxu1 %v927_v8  ;;  %v782_v55 = vld [vmem:[#allocation4 + $0x90] sm:$0xff]  ;;  %v984_v8 = vld [vmem:[#allocation4 + $0x6e0] sm:$0xff] }
 0x1d2   : > { %1030 = vmatpush.msrb.mxu2 %v820_v59  ;;  %v774_v57 = vld [vmem:[#allocation4 + $0x50] sm:$0xff] }
 0x1d3   : > { %1050 = vmatpush.msrb.mxu3 %v948_v61  ;;  %1174 = vmatpush.msra.mxu1 %v919_v24  ;;  %v902_v58 = vld [vmem:[#allocation4 + $0x450] sm:$0xff]  ;;  %v767_v61 = vld [vmem:[#allocation4 + $0x18] sm:$0xff]  ;;  %v976_v24 = vld [vmem:[#allocation4 + $0x6a0] sm:$0xff] }
 0x1d4   : > { %1031 = vmatpush.msrb.mxu2 %v812_v63  ;;  %v766_v59 = vld [vmem:[#allocation4 + $0x10] sm:$0xff]  ;;  %1157 = vmatpush.msra.mxu0 %v767_v61  ;;  %v768_v61 = vld [vmem:[#allocation4 + $0x20] sm:$0xff] }
 0x1d5   : > { %1051 = vmatpush.msrb.mxu3 %v940_v1  ;;  %1175 = vmatpush.msra.mxu1 %v911_v29  ;;  %v1016_v1 = vld [vmem:[#allocation4 + $0x7e0] sm:$0xff]  ;;  %v969_v29 = vld [vmem:[#allocation4 + $0x668] sm:$0xff] }
 0x1d6   : > { %1032 = vmatpush.msrb.mxu2 %v804_v3  ;;  %v889_v3 = vld [vmem:[#allocation4 + $0x3e8] sm:$0xff] }
 0x1d7   : > { %1052 = vmatpush.msrb.mxu3 %v932_v5  ;;  %1176 = vmatpush.msra.mxu1 %v903_v33  ;;  %v880_v5 = vld [vmem:[#allocation4 + $0x3a0] sm:$0xff]  ;;  %v961_v33 = vld [vmem:[#allocation4 + $0x628] sm:$0xff] }
 0x1d8   : > { %1033 = vmatpush.msrb.mxu2 %v796_v14  ;;  %v881_v14 = vld [vmem:[#allocation4 + $0x3a8] sm:$0xff] }
 0x1d9   : > { %1053 = vmatpush.msrb.mxu3 %v924_v15  ;;  %1177 = vmatpush.msra.mxu1 %v895_v62  ;;  %v872_v15 = vld [vmem:[#allocation4 + $0x360] sm:$0xff] }
 0x1da   : > { %1034 = vmatpush.msrb.mxu2 %v788_v17  ;;  %v873_v17 = vld [vmem:[#allocation4 + $0x368] sm:$0xff]  ;;  %v896_v62 = vld [vmem:[#allocation4 + $0x420] sm:$0xff] }
 0x1db   : > { %1054 = vmatpush.msrb.mxu3 %v916_v18  ;;  %v864_v18 = vld [vmem:[#allocation4 + $0x320] sm:$0xff] }
 0x1dc   : > { %1035 = vmatpush.msrb.mxu2 %v780_v11  ;;  %v865_v11 = vld [vmem:[#allocation4 + $0x328] sm:$0xff] }
 0x1dd   : > { %1055 = vmatpush.msrb.mxu3 %v908_v21  ;;  %v856_v21 = vld [vmem:[#allocation4 + $0x2e0] sm:$0xff] }
 0x1de   : > { %1036 = vmatpush.msrb.mxu2 %v772_v22  ;;  %v857_v22 = vld [vmem:[#allocation4 + $0x2e8] sm:$0xff] }
 0x1df   : > { %1056 = vmatpush.msrb.mxu3 %v900_v9  ;;  %v848_v9 = vld [vmem:[#allocation4 + $0x2a0] sm:$0xff] }
 0x1e0   : > { %1037 = vmatpush.msrb.mxu2 %v764_v25  ;;  %v849_v25 = vld [vmem:[#allocation4 + $0x2a8] sm:$0xff] }
 0x1e1   : > { %1057 = vmatpush.msrb.mxu3 %v892_v6  ;;  %v840_v6 = vld [vmem:[#allocation4 + $0x260] sm:$0xff] }
 0x1e2   : > { %1102 = vmatpush.msra.mxu2 %v886_v7  ;;  %v968_v7 = vld [vmem:[#allocation4 + $0x660] sm:$0xff] }
 0x1e3   : > { %1122 = vmatpush.msra.mxu3 %v1014_v28  ;;  %v841_v28 = vld [vmem:[#allocation4 + $0x268] sm:$0xff] }
 0x1e4   : > { %1103 = vmatpush.msra.mxu2 %v878_v30  ;;  %v832_v30 = vld [vmem:[#allocation4 + $0x220] sm:$0xff] }
 0x1e5   : > { %1123 = vmatpush.msra.mxu3 %v1006_v32  ;;  %v833_v32 = vld [vmem:[#allocation4 + $0x228] sm:$0xff] }
 0x1e6   : > { %1104 = vmatpush.msra.mxu2 %v870_v34  ;;  %v824_v34 = vld [vmem:[#allocation4 + $0x1e0] sm:$0xff] }
 0x1e7   : > { %1124 = vmatpush.msra.mxu3 %v998_v35  ;;  %v952_v35 = vld [vmem:[#allocation4 + $0x5e0] sm:$0xff] }
 0x1e8   : > { %1105 = vmatpush.msra.mxu2 %v862_v36  ;;  %v825_v36 = vld [vmem:[#allocation4 + $0x1e8] sm:$0xff] }
 0x1e9   : > { %1125 = vmatpush.msra.mxu3 %v990_v37  ;;  %v953_v37 = vld [vmem:[#allocation4 + $0x5e8] sm:$0xff] }
 0x1ea   : > { %1106 = vmatpush.msra.mxu2 %v854_v38  ;;  %v816_v38 = vld [vmem:[#allocation4 + $0x1a0] sm:$0xff] }
 0x1eb   : > { %1126 = vmatpush.msra.mxu3 %v982_v40  ;;  %v944_v40 = vld [vmem:[#allocation4 + $0x5a0] sm:$0xff] }
 0x1ec   : > { %1107 = vmatpush.msra.mxu2 %v846_v41  ;;  %v817_v41 = vld [vmem:[#allocation4 + $0x1a8] sm:$0xff] }
 0x1ed   : > { %1127 = vmatpush.msra.mxu3 %v974_v42  ;;  %v945_v42 = vld [vmem:[#allocation4 + $0x5a8] sm:$0xff] }
 0x1ee   : > { %1108 = vmatpush.msra.mxu2 %v838_v43  ;;  %v808_v43 = vld [vmem:[#allocation4 + $0x160] sm:$0xff] }
 0x1ef   : > { %1128 = vmatpush.msra.mxu3 %v966_v44  ;;  %v936_v44 = vld [vmem:[#allocation4 + $0x560] sm:$0xff] }
 0x1f0   : > { %1109 = vmatpush.msra.mxu2 %v830_v45  ;;  %v809_v45 = vld [vmem:[#allocation4 + $0x168] sm:$0xff] }
 0x1f1   : > { %1129 = vmatpush.msra.mxu3 %v958_v46  ;;  %v937_v46 = vld [vmem:[#allocation4 + $0x568] sm:$0xff] }
 0x1f2   : > { %1110 = vmatpush.msra.mxu2 %v822_v47  ;;  %v800_v47 = vld [vmem:[#allocation4 + $0x120] sm:$0xff] }
 0x1f3   : > { %1130 = vmatpush.msra.mxu3 %v950_v48  ;;  %v928_v48 = vld [vmem:[#allocation4 + $0x520] sm:$0xff] }
 0x1f4   : > { %1111 = vmatpush.msra.mxu2 %v814_v49  ;;  %v801_v49 = vld [vmem:[#allocation4 + $0x128] sm:$0xff] }
 0x1f5   : > { %1131 = vmatpush.msra.mxu3 %v942_v50  ;;  %v929_v50 = vld [vmem:[#allocation4 + $0x528] sm:$0xff] }
 0x1f6   : > { %1112 = vmatpush.msra.mxu2 %v806_v27  ;;  %v792_v27 = vld [vmem:[#allocation4 + $0xe0] sm:$0xff] }
 0x1f7   : > { %1132 = vmatpush.msra.mxu3 %v934_v51  ;;  %v920_v51 = vld [vmem:[#allocation4 + $0x4e0] sm:$0xff] }
 0x1f8   : > { %1113 = vmatpush.msra.mxu2 %v798_v52  ;;  %v793_v52 = vld [vmem:[#allocation4 + $0xe8] sm:$0xff] }
 0x1f9   : > { %1133 = vmatpush.msra.mxu3 %v926_v53  ;;  %v921_v53 = vld [vmem:[#allocation4 + $0x4e8] sm:$0xff] }
 0x1fa   : > { %1114 = vmatpush.msra.mxu2 %v790_v39  ;;  %v784_v39 = vld [vmem:[#allocation4 + $0xa0] sm:$0xff] }
 0x1fb   : > { %1134 = vmatpush.msra.mxu3 %v918_v54  ;;  %v912_v54 = vld [vmem:[#allocation4 + $0x4a0] sm:$0xff] }
 0x1fc   : > { %1115 = vmatpush.msra.mxu2 %v782_v55  ;;  %v785_v55 = vld [vmem:[#allocation4 + $0xa8] sm:$0xff] }
 0x1fd   : > { %1135 = vmatpush.msra.mxu3 %v910_v56  ;;  %v913_v56 = vld [vmem:[#allocation4 + $0x4a8] sm:$0xff] }
 0x1fe   : > { %1116 = vmatpush.msra.mxu2 %v774_v57  ;;  %v776_v57 = vld [vmem:[#allocation4 + $0x60] sm:$0xff] }
 0x1ff   : > { %1136 = vmatpush.msra.mxu3 %v902_v58  ;;  %v904_v58 = vld [vmem:[#allocation4 + $0x460] sm:$0xff] }
 0x200   : > { %1117 = vmatpush.msra.mxu2 %v766_v59  ;;  %v777_v59 = vld [vmem:[#allocation4 + $0x68] sm:$0xff] }
 0x201   : > { %1137 = vmatpush.msra.mxu3 %v894_v60  ;;  %v905_v60 = vld [vmem:[#allocation4 + $0x468] sm:$0xff] }
 0x244   : > { %v1918_v63 = vpop.f32.mrf.mxu2 }
 0x245   : > { %v1920_v2 = vpop.f32.mrf.mxu3  ;;  %1038 = vmatmul.f32.vlgmr.msrb.gmra.mxu2 %v1918_v63  ;;  %1078 = vmatmul.f32.vlgmr.msrb.gmra.mxu0 %v1918_v63 }
 0x246   : > { %1058 = vmatmul.f32.vlgmr.msrb.gmra.mxu3 %v1920_v2  ;;  %1098 = vmatmul.f32.vlgmr.msrb.gmra.mxu1 %v1920_v2 }
 0x247   : > { %1182 = vmatpush.msrb.mxu2 %v888_v0  ;;  %1202 = vmatpush.msrb.mxu3 %v1016_v1  ;;  %v769_v0 = vld [vmem:[#allocation4 + $0x28] sm:$0xff] }
 0x248   : > { %1222 = vmatpush.msrb.mxu0 %v889_v3  ;;  %1242 = vmatpush.msrb.mxu1 %v1017_v4  ;;  %v897_v1 = vld [vmem:[#allocation4 + $0x428] sm:$0xff]  ;;  %v890_v3 = vld [vmem:[#allocation4 + $0x3f0] sm:$0xff] }
 0x249   : > { %1183 = vmatpush.msrb.mxu2 %v880_v5  ;;  %1203 = vmatpush.msrb.mxu3 %v1008_v12  ;;  %v1018_v4 = vld [vmem:[#allocation4 + $0x7f0] sm:$0xff]  ;;  %v891_v5 = vld [vmem:[#allocation4 + $0x3f8] sm:$0xff] }
 0x24a   : > { %1223 = vmatpush.msrb.mxu0 %v881_v14  ;;  %1243 = vmatpush.msrb.mxu1 %v1009_v13  ;;  %v1019_v12 = vld [vmem:[#allocation4 + $0x7f8] sm:$0xff]  ;;  %v882_v14 = vld [vmem:[#allocation4 + $0x3b0] sm:$0xff] }
 0x24b   : > { %1184 = vmatpush.msrb.mxu2 %v872_v15  ;;  %1204 = vmatpush.msrb.mxu3 %v1000_v16  ;;  %v1010_v13 = vld [vmem:[#allocation4 + $0x7b0] sm:$0xff]  ;;  %v883_v15 = vld [vmem:[#allocation4 + $0x3b8] sm:$0xff] }
 0x24c   : > { %1224 = vmatpush.msrb.mxu0 %v873_v17  ;;  %1244 = vmatpush.msrb.mxu1 %v1001_v10  ;;  %v1011_v16 = vld [vmem:[#allocation4 + $0x7b8] sm:$0xff]  ;;  %v874_v17 = vld [vmem:[#allocation4 + $0x370] sm:$0xff] }
 0x24d   : > { %1185 = vmatpush.msrb.mxu2 %v864_v18  ;;  %1205 = vmatpush.msrb.mxu3 %v992_v19  ;;  %v1002_v10 = vld [vmem:[#allocation4 + $0x770] sm:$0xff]  ;;  %v875_v18 = vld [vmem:[#allocation4 + $0x378] sm:$0xff] }
 0x24e   : > { %1225 = vmatpush.msrb.mxu0 %v865_v11  ;;  %1245 = vmatpush.msrb.mxu1 %v993_v20  ;;  %v1003_v19 = vld [vmem:[#allocation4 + $0x778] sm:$0xff]  ;;  %v866_v11 = vld [vmem:[#allocation4 + $0x330] sm:$0xff] }
 0x24f   : > { %1118 = vmatmul.f32.vlgmr.msra.gmra.mxu2 %v1918_v63  ;;  %1138 = vmatmul.f32.vlgmr.msra.gmra.mxu3 %v1920_v2  ;;  %v994_v20 = vld [vmem:[#allocation4 + $0x730] sm:$0xff] }
 0x250   : > { %1158 = vmatmul.f32.vlgmr.msra.gmra.mxu0 %v1918_v63  ;;  %1178 = vmatmul.f32.vlgmr.msra.gmra.mxu1 %v1920_v2 }
 0x251   : > { %1186 = vmatpush.msrb.mxu2 %v856_v21  ;;  %1206 = vmatpush.msrb.mxu3 %v984_v8  ;;  %v867_v21 = vld [vmem:[#allocation4 + $0x338] sm:$0xff] }
 0x252   : > { %1226 = vmatpush.msrb.mxu0 %v857_v22  ;;  %1246 = vmatpush.msrb.mxu1 %v985_v23  ;;  %v995_v8 = vld [vmem:[#allocation4 + $0x738] sm:$0xff]  ;;  %v858_v22 = vld [vmem:[#allocation4 + $0x2f0] sm:$0xff] }
 0x253   : > { %1187 = vmatpush.msrb.mxu2 %v848_v9  ;;  %1207 = vmatpush.msrb.mxu3 %v976_v24  ;;  %v986_v23 = vld [vmem:[#allocation4 + $0x6f0] sm:$0xff]  ;;  %v859_v9 = vld [vmem:[#allocation4 + $0x2f8] sm:$0xff] }
 0x254   : > { %1227 = vmatpush.msrb.mxu0 %v849_v25  ;;  %1247 = vmatpush.msrb.mxu1 %v977_v26  ;;  %v987_v24 = vld [vmem:[#allocation4 + $0x6f8] sm:$0xff]  ;;  %v850_v25 = vld [vmem:[#allocation4 + $0x2b0] sm:$0xff] }
 0x255   : > { %1188 = vmatpush.msrb.mxu2 %v840_v6  ;;  %1208 = vmatpush.msrb.mxu3 %v968_v7  ;;  %v978_v26 = vld [vmem:[#allocation4 + $0x6b0] sm:$0xff]  ;;  %v851_v6 = vld [vmem:[#allocation4 + $0x2b8] sm:$0xff] }
 0x256   : > { %1228 = vmatpush.msrb.mxu0 %v841_v28  ;;  %1248 = vmatpush.msrb.mxu1 %v969_v29  ;;  %v979_v7 = vld [vmem:[#allocation4 + $0x6b8] sm:$0xff]  ;;  %v842_v28 = vld [vmem:[#allocation4 + $0x270] sm:$0xff] }
 0x257   : > { %1189 = vmatpush.msrb.mxu2 %v832_v30  ;;  %1209 = vmatpush.msrb.mxu3 %v960_v31  ;;  %v970_v29 = vld [vmem:[#allocation4 + $0x670] sm:$0xff]  ;;  %v843_v30 = vld [vmem:[#allocation4 + $0x278] sm:$0xff] }
 0x258   : > { %1229 = vmatpush.msrb.mxu0 %v833_v32  ;;  %1249 = vmatpush.msrb.mxu1 %v961_v33  ;;  %v971_v31 = vld [vmem:[#allocation4 + $0x678] sm:$0xff]  ;;  %v834_v32 = vld [vmem:[#allocation4 + $0x230] sm:$0xff] }
 0x259   : > { %1190 = vmatpush.msrb.mxu2 %v824_v34  ;;  %1210 = vmatpush.msrb.mxu3 %v952_v35  ;;  %v962_v33 = vld [vmem:[#allocation4 + $0x630] sm:$0xff]  ;;  %v835_v34 = vld [vmem:[#allocation4 + $0x238] sm:$0xff] }
 0x25a   : > { %1230 = vmatpush.msrb.mxu0 %v825_v36  ;;  %1250 = vmatpush.msrb.mxu1 %v953_v37  ;;  %v963_v35 = vld [vmem:[#allocation4 + $0x638] sm:$0xff]  ;;  %v826_v36 = vld [vmem:[#allocation4 + $0x1f0] sm:$0xff] }
 0x25b   : > { %1191 = vmatpush.msrb.mxu2 %v816_v38  ;;  %1211 = vmatpush.msrb.mxu3 %v944_v40  ;;  %v954_v37 = vld [vmem:[#allocation4 + $0x5f0] sm:$0xff]  ;;  %v827_v38 = vld [vmem:[#allocation4 + $0x1f8] sm:$0xff] }
 0x25c   : > { %1231 = vmatpush.msrb.mxu0 %v817_v41  ;;  %1251 = vmatpush.msrb.mxu1 %v945_v42  ;;  %v955_v40 = vld [vmem:[#allocation4 + $0x5f8] sm:$0xff]  ;;  %v818_v41 = vld [vmem:[#allocation4 + $0x1b0] sm:$0xff] }
 0x25d   : > { %1192 = vmatpush.msrb.mxu2 %v808_v43  ;;  %1212 = vmatpush.msrb.mxu3 %v936_v44  ;;  %v946_v42 = vld [vmem:[#allocation4 + $0x5b0] sm:$0xff]  ;;  %v819_v43 = vld [vmem:[#allocation4 + $0x1b8] sm:$0xff] }
 0x25e   : > { %1232 = vmatpush.msrb.mxu0 %v809_v45  ;;  %1252 = vmatpush.msrb.mxu1 %v937_v46  ;;  %v947_v44 = vld [vmem:[#allocation4 + $0x5b8] sm:$0xff]  ;;  %v810_v45 = vld [vmem:[#allocation4 + $0x170] sm:$0xff] }
 0x25f   : > { %1193 = vmatpush.msrb.mxu2 %v800_v47  ;;  %1213 = vmatpush.msrb.mxu3 %v928_v48  ;;  %v938_v46 = vld [vmem:[#allocation4 + $0x570] sm:$0xff]  ;;  %v811_v47 = vld [vmem:[#allocation4 + $0x178] sm:$0xff] }
 0x260   : > { %1233 = vmatpush.msrb.mxu0 %v801_v49  ;;  %1253 = vmatpush.msrb.mxu1 %v929_v50  ;;  %v939_v48 = vld [vmem:[#allocation4 + $0x578] sm:$0xff]  ;;  %v802_v49 = vld [vmem:[#allocation4 + $0x130] sm:$0xff] }
 0x261   : > { %1194 = vmatpush.msrb.mxu2 %v792_v27  ;;  %1214 = vmatpush.msrb.mxu3 %v920_v51  ;;  %v930_v50 = vld [vmem:[#allocation4 + $0x530] sm:$0xff]  ;;  %v803_v27 = vld [vmem:[#allocation4 + $0x138] sm:$0xff] }
 0x262   : > { %1234 = vmatpush.msrb.mxu0 %v793_v52  ;;  %1254 = vmatpush.msrb.mxu1 %v921_v53  ;;  %v931_v51 = vld [vmem:[#allocation4 + $0x538] sm:$0xff]  ;;  %v794_v52 = vld [vmem:[#allocation4 + $0xf0] sm:$0xff] }
 0x263   : > { %1195 = vmatpush.msrb.mxu2 %v784_v39  ;;  %1215 = vmatpush.msrb.mxu3 %v912_v54  ;;  %v922_v53 = vld [vmem:[#allocation4 + $0x4f0] sm:$0xff]  ;;  %v795_v39 = vld [vmem:[#allocation4 + $0xf8] sm:$0xff] }
 0x264   : > { %1235 = vmatpush.msrb.mxu0 %v785_v55  ;;  %1255 = vmatpush.msrb.mxu1 %v913_v56  ;;  %v923_v54 = vld [vmem:[#allocation4 + $0x4f8] sm:$0xff]  ;;  %v786_v55 = vld [vmem:[#allocation4 + $0xb0] sm:$0xff] }
 0x265   : > { %1196 = vmatpush.msrb.mxu2 %v776_v57  ;;  %1216 = vmatpush.msrb.mxu3 %v904_v58  ;;  %v914_v56 = vld [vmem:[#allocation4 + $0x4b0] sm:$0xff]  ;;  %v787_v57 = vld [vmem:[#allocation4 + $0xb8] sm:$0xff] }
 0x266   : > { %1236 = vmatpush.msrb.mxu0 %v777_v59  ;;  %1256 = vmatpush.msrb.mxu1 %v905_v60  ;;  %v915_v58 = vld [vmem:[#allocation4 + $0x4b8] sm:$0xff]  ;;  %v778_v59 = vld [vmem:[#allocation4 + $0x70] sm:$0xff] }
 0x267   : > { %1197 = vmatpush.msrb.mxu2 %v768_v61  ;;  %1217 = vmatpush.msrb.mxu3 %v896_v62  ;;  %v906_v60 = vld [vmem:[#allocation4 + $0x470] sm:$0xff]  ;;  %v779_v61 = vld [vmem:[#allocation4 + $0x78] sm:$0xff] }
 0x268   : > { %1237 = vmatpush.msrb.mxu0 %v769_v0  ;;  %1257 = vmatpush.msrb.mxu1 %v897_v1  ;;  %v907_v62 = vld [vmem:[#allocation4 + $0x478] sm:$0xff]  ;;  %v770_v0 = vld [vmem:[#allocation4 + $0x30] sm:$0xff] }
 0x269   : > { %1198 = vmatmul.f32.vlgmr.msrb.gmra.mxu2 %v1918_v63  ;;  %1218 = vmatmul.f32.vlgmr.msrb.gmra.mxu3 %v1920_v2  ;;  %v898_v1 = vld [vmem:[#allocation4 + $0x430] sm:$0xff] }
 0x26a   : > { %1238 = vmatmul.f32.vlgmr.msrb.gmra.mxu0 %v1918_v63  ;;  %1258 = vmatmul.f32.vlgmr.msrb.gmra.mxu1 %v1920_v2 }
 0x26b   : > { %1262 = vmatpush.msra.mxu2 %v890_v3  ;;  %1282 = vmatpush.msra.mxu3 %v1018_v4  ;;  %v771_v3 = vld [vmem:[#allocation4 + $0x38] sm:$0xff] }
 0x26c   : > { %1302 = vmatpush.msra.mxu0 %v891_v5  ;;  %1322 = vmatpush.msra.mxu1 %v1019_v12  ;;  %v899_v4 = vld [vmem:[#allocation4 + $0x438] sm:$0xff] }
 0x26d   : > { %1263 = vmatpush.msra.mxu2 %v882_v14  ;;  %1283 = vmatpush.msra.mxu3 %v1010_v13 }
 0x26e   : > { %1303 = vmatpush.msra.mxu0 %v883_v15  ;;  %1323 = vmatpush.msra.mxu1 %v1011_v16 }
 0x26f   : > { %1264 = vmatpush.msra.mxu2 %v874_v17  ;;  %1284 = vmatpush.msra.mxu3 %v1002_v10 }
 0x270   : > { %1304 = vmatpush.msra.mxu0 %v875_v18  ;;  %1324 = vmatpush.msra.mxu1 %v1003_v19  ;;  %v1021_v19 = vstv %s1020_s30 }
 0x271   : > { %1265 = vmatpush.msra.mxu2 %v866_v11  ;;  %1285 = vmatpush.msra.mxu3 %v994_v20 }
 0x272   : > { %1305 = vmatpush.msra.mxu0 %v867_v21  ;;  %1325 = vmatpush.msra.mxu1 %v995_v8 }
 0x273   : > { %1266 = vmatpush.msra.mxu2 %v858_v22  ;;  %1286 = vmatpush.msra.mxu3 %v986_v23 }
 0x274   : > { %1306 = vmatpush.msra.mxu0 %v859_v9  ;;  %1326 = vmatpush.msra.mxu1 %v987_v24 }
 0x275   : > { %1267 = vmatpush.msra.mxu2 %v850_v25  ;;  %1287 = vmatpush.msra.mxu3 %v978_v26 }
 0x276   : > { %1307 = vmatpush.msra.mxu0 %v851_v6  ;;  %1327 = vmatpush.msra.mxu1 %v979_v7 }
 0x277   : > { %1268 = vmatpush.msra.mxu2 %v842_v28  ;;  %1288 = vmatpush.msra.mxu3 %v970_v29 }
 0x278   : > { %1308 = vmatpush.msra.mxu0 %v843_v30  ;;  %1328 = vmatpush.msra.mxu1 %v971_v31 }
 0x279   : > { %1269 = vmatpush.msra.mxu2 %v834_v32  ;;  %1289 = vmatpush.msra.mxu3 %v962_v33 }
 0x27a   : > { %1309 = vmatpush.msra.mxu0 %v835_v34  ;;  %1329 = vmatpush.msra.mxu1 %v963_v35 }
 0x27b   : > { %1270 = vmatpush.msra.mxu2 %v826_v36  ;;  %1290 = vmatpush.msra.mxu3 %v954_v37 }
 0x27c   : > { %1310 = vmatpush.msra.mxu0 %v827_v38  ;;  %1330 = vmatpush.msra.mxu1 %v955_v40 }
 0x27d   : > { %1271 = vmatpush.msra.mxu2 %v818_v41  ;;  %1291 = vmatpush.msra.mxu3 %v946_v42 }
 0x27e   : > { %1311 = vmatpush.msra.mxu0 %v819_v43  ;;  %1331 = vmatpush.msra.mxu1 %v947_v44 }
 0x27f   : > { %1272 = vmatpush.msra.mxu2 %v810_v45  ;;  %1292 = vmatpush.msra.mxu3 %v938_v46 }
 0x280   : > { %1312 = vmatpush.msra.mxu0 %v811_v47  ;;  %1332 = vmatpush.msra.mxu1 %v939_v48 }
 0x281   : > { %1273 = vmatpush.msra.mxu2 %v802_v49  ;;  %1293 = vmatpush.msra.mxu3 %v930_v50 }
 0x282   : > { %1313 = vmatpush.msra.mxu0 %v803_v27  ;;  %1333 = vmatpush.msra.mxu1 %v931_v51 }
 0x283   : > { %1274 = vmatpush.msra.mxu2 %v794_v52  ;;  %1294 = vmatpush.msra.mxu3 %v922_v53 }
 0x284   : > { %1314 = vmatpush.msra.mxu0 %v795_v39  ;;  %1334 = vmatpush.msra.mxu1 %v923_v54 }
 0x285   : > { %1275 = vmatpush.msra.mxu2 %v786_v55  ;;  %1295 = vmatpush.msra.mxu3 %v914_v56 }
 0x286   : > { %1315 = vmatpush.msra.mxu0 %v787_v57  ;;  %1335 = vmatpush.msra.mxu1 %v915_v58 }
 0x287   : > { %1276 = vmatpush.msra.mxu2 %v778_v59  ;;  %1296 = vmatpush.msra.mxu3 %v906_v60 }
 0x288   : > { %1316 = vmatpush.msra.mxu0 %v779_v61  ;;  %1336 = vmatpush.msra.mxu1 %v907_v62 }
 0x289   : > { %1277 = vmatpush.msra.mxu2 %v770_v0  ;;  %1297 = vmatpush.msra.mxu3 %v898_v1 }
 0x28a   : > { %1317 = vmatpush.msra.mxu0 %v771_v3  ;;  %1337 = vmatpush.msra.mxu1 %v899_v4 }
 0x28b   : > { %1278 = vmatmul.f32.vlgmr.msra.gmra.mxu2 %v1918_v63  ;;  %1298 = vmatmul.f32.vlgmr.msra.gmra.mxu3 %v1920_v2 }
 0x28c   : > { %1318 = vmatmul.f32.vlgmr.msra.gmra.mxu0 %v1918_v63  ;;  %1338 = vmatmul.f32.vlgmr.msra.gmra.mxu1 %v1920_v2 }
 0x2c2   : > { %v1079_v5 = vpop.f32.mrf.mxu0 }
 0x2c3   : > { %v1099_v12 = vpop.f32.mrf.mxu1  ;;  %v1080_v23 = vadd.f32 %v1079_v5, %v1021_v19 }
 0x2c5   : > { %v1100_v28 = vadd.f32 %v1099_v12, %v1080_v23 }
 0x2c7   : > { %v1350_v41 = vrot.slane %v1100_v28, 7 }
 0x2c8   : > { %v1039_v14 = vpop.f32.mrf.mxu2 }
 0x2c9   : > { %v1059_v13 = vpop.f32.mrf.mxu3  ;;  %v1040_v6 = vadd.f32 %v1039_v14, %v1021_v19 }
 0x2cb   : > { %v1060_v37 = vadd.f32 %v1059_v13, %v1040_v6 }
 0x2cd   : > { %v1159_v15 = vpop.f32.mrf.mxu0  ;;  %v1179_v16 = vpop.f32.mrf.mxu1  ;;  %v1358_v46 = vsel %vm1357_vm12, %v1060_v37, %v1350_v41 }
 0x2ce   : > { %v1160_v63 = vadd.f32 %v1159_v15, %v1021_v19 }
 0x2d0   : > { %v1180_v26 = vadd.f32 %v1179_v16, %v1160_v63 }
 0x2d2   : > { %v1119_v17 = vpop.f32.mrf.mxu2  ;;  %v1139_v10 = vpop.f32.mrf.mxu3  ;;  %v1352_v35 = vrot.slane %v1180_v26, 5 }
 0x2d3   : > { %v1120_v11 = vadd.f32 %v1119_v17, %v1021_v19 }
 0x2d5   : > { %v1140_v9 = vadd.f32 %v1139_v10, %v1120_v11 }
 0x2d7   : > { %v1351_v29 = vrot.slane %v1140_v9, 6 }
 0x2d9   : > { %v1360_v42 = vsel %vm1359_vm11, %v1351_v29, %v1352_v35 }
 0x2da   : > { %v1362_v49 = vsel %vm1361_vm13, %v1358_v46, %v1360_v42 }
 0x2e7   : > { %v1239_v18 = vpop.f32.mrf.mxu0  ;;  %v1259_v20 = vpop.f32.mrf.mxu1 }
 0x2e8   : > { %v1240_v24 = vadd.f32 %v1239_v18, %v1021_v19 }
 0x2ea   : > { %v1260_v32 = vadd.f32 %v1259_v20, %v1240_v24 }
 0x2ec   : > { %v1199_v21 = vpop.f32.mrf.mxu2  ;;  %v1219_v8 = vpop.f32.mrf.mxu3  ;;  %v1354_v43 = vrot.slane %v1260_v32, 3 }
 0x2ed   : > { %v1200_v2 = vadd.f32 %v1199_v21, %v1021_v19 }
 0x2ef   : > { %v1220_v7 = vadd.f32 %v1219_v8, %v1200_v2 }
 0x2f1   : > { %v1353_v38 = vrot.slane %v1220_v7, 4 }
 0x2f3   : > { %v1364_v47 = vsel %vm1363_vm14, %v1353_v38, %v1354_v43 }
 0x309   : > { %v1319_v22 = vpop.f32.mrf.mxu0  ;;  %v1339_v30 = vpop.f32.mrf.mxu1 }
 0x30a   : > { %v1320_v25 = vadd.f32 %v1319_v22, %v1021_v19 }
 0x30c   : > { %v1340_v33 = vadd.f32 %v1339_v30, %v1320_v25 }
 0x30e   : > { %v1279_v31 = vpop.f32.mrf.mxu2  ;;  %v1299_v36 = vpop.f32.mrf.mxu3  ;;  %v1356_v44 = vrot.slane %v1340_v33, 1 }
 0x30f   : > { %v1280_v34 = vadd.f32 %v1279_v31, %v1021_v19 }
 0x311   : > { %v1300_v40 = vadd.f32 %v1299_v36, %v1280_v34 }
 0x313   : > { %v1355_v45 = vrot.slane %v1300_v40, 2 }
 0x315   : > { %v1366_v48 = vsel %vm1365_vm15, %v1355_v45, %v1356_v44 }
 0x316   : > { %v1368_v50 = vsel %vm1367_vm1, %v1364_v47, %v1366_v48 }
 0x317   : > { %v1369_v27 = vsel %vm408_vm0, %v1362_v49, %v1368_v50 }
 0x318   : > { %1371 = vst [vmem:[%s289_s6] sm:$0xff] %v1369_v27 }
 0x319   : > { %1622 = shalt.err (!%p1619_p8)
}
 0x31a   : > { %1505 = dma.vmem_to_hbm [thread:$0]  (%p1756_p5), %s1386_s18, 128, %s1388_s19, %s1373_s20  }
 0x31b PF: > { %p1517_p9 = scmp.ge.s32.totalorder %s1661_s29, 2  ;;  %s1399_s9 = sand.u32 1, %s1649_s26  }
 0x31c   : > { %s1400_s14 = scalar_lea.sflag [#allocation6], %s1399_s9 }
 0x31d   : > { %p1512_p10 = pnand %p1517_p9, %p1760_p6 }
 0x31f   : > { %p1513_p11 = pneg %p1512_p10 }
 0x321   : > { %1644 = dma.done.wait (%p1513_p11), %s1400_s14, 128  }
 0x322   : > { %1646 = vsyncadd (%p1513_p11), %s1400_s14, 4294967168  ;;  %p19_p12 = scmp.ge.s32.totalorder %s1743_s8, 4   ;;  %s1990_s26 = smov %s1653_s27 }
 0x323   : > { %s1991_s27 = smov %s1657_s28  ;;  %s1992_s28 = smov %s1754_s11 }
 0x324   : > { %s1993_s29 = smov %s1743_s8  ;;  %21 = sbr.rel (!%p19_p12) target bundleno = 6 (0x6), region = 96 }
 0x329   :  { %1406 = vsyncpa [#allocation5], 1 }
 0x32a   :  { %1408 = vsyncpa [#allocation5 + $0x1], 1 }
 0x32b   :  { %1409 = vsyncpa [#allocation6], 1 }
 0x32c   :  { %1411 = vsyncpa [#allocation6 + $0x1], 1 }

</bundles_post_ra>
